<compile_context>
chip_gen: v6e
topology: v6e:2x2x1
jax: 0.10.0
libtpu: 0.0.40
codegen_flags: <defaults>
</compile_context>

<pallas_src>
import functools

import jax
import jax.numpy as jnp
from jax.experimental import pallas as pl
from jax.experimental.pallas import tpu as pltpu


def _round_up(x, m):
    return (x + m - 1) // m * m


def _pick_time_chunk(T, Bt, Ip, Hp, *, max_chunk=64, vmem_budget=28 * 1024 * 1024):
    """Largest Tc (<= max_chunk, <= T) whose VMEM footprint fits the budget."""
    dt = 4  # f32 bytes
    # resident weights/bias (x2 conservative for buffering) + h/c/out state
    fixed = 2 * (Ip * 4 * Hp + Hp * 4 * Hp + 4 * Hp) * dt + 3 * Bt * Hp * dt
    best = 1
    for tc in range(1, min(T, max_chunk) + 1):
        per_chunk = (2 * tc * Bt * Ip + tc * Bt * 4 * Hp) * dt  # x dbl-buf + gx scratch
        if fixed + per_chunk <= vmem_budget:
            best = tc
        else:
            break
    return best


def _lstm_kernel(x_ref, wih_ref, whh_ref, bias_ref, h_out_ref, c_scr, gx_scr, *,
                 hidden_p, time_chunk, seq_len, padded_len, unroll):
    """One grid step = `time_chunk` LSTM timesteps for one batch tile.

    x_ref   : (Tc, Bt, Ip)   raw input chunk (time-major, zero-padded)
    wih_ref : (Ip, 4*Hp)     W_ih^T, per-gate padded (resident)
    whh_ref : (Hp, 4*Hp)     W_hh^T, per-gate padded (resident)
    bias_ref: (1, 4*Hp)      b_ih + b_hh, per-gate padded (resident)
    h_out   : (Bt, Hp)       hidden state; resident across time chunks (the carry)
    c_scr   : (Bt, Hp)       cell state scratch
    gx_scr  : (Tc, Bt, 4Hp)  per-chunk x-projection scratch
    """
    t_blk = pl.program_id(1)

    @pl.when(t_blk == 0)
    def _():
        h_out_ref[...] = jnp.zeros_like(h_out_ref)
        c_scr[...] = jnp.zeros_like(c_scr)

    Hp = hidden_p
    Tc = time_chunk
    Bt = x_ref.shape[1]
    Ip = x_ref.shape[2]

    # Fused input projection for the whole chunk: one MXU-friendly matmul.
    x_chunk = x_ref[...].reshape(Tc * Bt, Ip)
    gx = jnp.dot(x_chunk, wih_ref[...], preferred_element_type=jnp.float32)
    gx_scr[...] = (gx + bias_ref[...]).reshape(Tc, Bt, 4 * Hp)

    def step(s, carry):
        h, c = carry
        # Only the recurrent matmul remains per step; whh is read from the ref
        # inside the body (no long-lived hoisted value).
        gates = gx_scr[s] + jnp.dot(h, whh_ref[...],
                                    preferred_element_type=jnp.float32)
        i_g = jax.nn.sigmoid(gates[:, 0 * Hp:1 * Hp])
        f_g = jax.nn.sigmoid(gates[:, 1 * Hp:2 * Hp])
        g_g = jnp.tanh(gates[:, 2 * Hp:3 * Hp])
        o_g = jax.nn.sigmoid(gates[:, 3 * Hp:4 * Hp])
        c_new = f_g * c + i_g * g_g
        h_new = o_g * jnp.tanh(c_new)
        if padded_len != seq_len:  # static: mask tail steps of the padded seq
            valid = (t_blk * Tc + s) < seq_len
            h_new = jnp.where(valid, h_new, h)
            c_new = jnp.where(valid, c_new, c)
        return h_new, c_new

    h, c = jax.lax.fori_loop(0, Tc, step, (h_out_ref[...], c_scr[...]),
                             unroll=unroll)
    h_out_ref[...] = h   # the output block IS the h carry (resident across chunks)
    c_scr[...] = c


def lstm_model_forward(x, params, time_chunk=None):
    """x: (B, T, I) float32.  Returns (B, output_size) float32."""
    B, T, I = x.shape
    H = params["w_hh"].shape[1]          # w_hh: (4H, H)
    f32 = jnp.float32

    Bp = _round_up(B, 8)                 # sublane alignment (f32)
    Hp = _round_up(H, 128)               # lane alignment per gate
    Ip = _round_up(I, 128)               # lane alignment of the input features

    # Batch tiles: 2 when possible so v7x's two TensorCores both get work.
    num_b_tiles = 2 if (Bp % 16 == 0) else 1
    Bt = Bp // num_b_tiles

    Tc = _pick_time_chunk(T, Bt, Ip, Hp) if time_chunk is None else time_chunk
    T_pad = _round_up(T, Tc)

    x = x.astype(f32)
    # Time-major + padded (transpose the tiny raw x, not a gx-sized tensor).
    x_tm = jnp.transpose(x, (1, 0, 2))                                   # (T, B, I)
    x_tm = jnp.pad(x_tm, ((0, T_pad - T), (0, Bp - B), (0, Ip - I)))     # (Tp,Bp,Ip)

    # W_ih^T: (I, 4H) -> per-gate padded (Ip, 4*Hp)
    wih_t = params["w_ih"].astype(f32).T.reshape(I, 4, H)
    wih_t = jnp.pad(wih_t, ((0, Ip - I), (0, 0), (0, Hp - H))).reshape(Ip, 4 * Hp)
    # W_hh^T: (H, 4H) -> per-gate padded (Hp, 4*Hp)
    whh_t = params["w_hh"].astype(f32).T.reshape(H, 4, H)
    whh_t = jnp.pad(whh_t, ((0, Hp - H), (0, 0), (0, Hp - H))).reshape(Hp, 4 * Hp)
    # Combined bias: (4H,) -> (1, 4*Hp)
    bias = (params["b_ih"] + params["b_hh"]).astype(f32).reshape(4, H)
    bias = jnp.pad(bias, ((0, 0), (0, Hp - H))).reshape(1, 4 * Hp)

    kernel = functools.partial(_lstm_kernel, hidden_p=Hp, time_chunk=Tc,
                               seq_len=T, padded_len=T_pad,
                               unroll=max(1, min(8, Tc)))

    h_last = pl.pallas_call(
        kernel,
        out_shape=jax.ShapeDtypeStruct((Bp, Hp), f32),
        grid_spec=pltpu.PrefetchScalarGridSpec(
            num_scalar_prefetch=0,
            grid=(Bp // Bt, T_pad // Tc),
            in_specs=[
                pl.BlockSpec((Tc, Bt, Ip), lambda b, t: (t, b, 0)),   # x chunk (streamed)
                pl.BlockSpec((Ip, 4 * Hp), lambda b, t: (0, 0)),      # W_ih^T (resident)
                pl.BlockSpec((Hp, 4 * Hp), lambda b, t: (0, 0)),      # W_hh^T (resident)
                pl.BlockSpec((1, 4 * Hp), lambda b, t: (0, 0)),       # bias   (resident)
            ],
            out_specs=pl.BlockSpec((Bt, Hp), lambda b, t: (b, 0)),
            scratch_shapes=[
                pltpu.VMEM((Bt, Hp), f32),            # c state
                pltpu.VMEM((Tc, Bt, 4 * Hp), f32),    # per-chunk x-projection
            ],
        ),
        compiler_params=pltpu.CompilerParams(
            # Batch tiles are independent; the time axis is a true recurrence.
            dimension_semantics=("parallel", "arbitrary"),
            vmem_limit_bytes=48 * 1024 * 1024,
        ),
    )(x_tm, wih_t, whh_t, bias)

    # Final FC (O=1, lane-sparse) on the lane-dense last hidden state: do in XLA.
    h_last = h_last[:B, :H]
    return h_last @ params["w_fc"].astype(f32).T + params["b_fc"].astype(f32)[None, :]


def init_params(key, input_size, hidden, output_size):
    """Deterministic init matching PyTorch nn.LSTM / nn.Linear shapes."""
    k = 1.0 / jnp.sqrt(hidden)
    keys = jax.random.split(key, 6)
    w_ih = jax.random.uniform(keys[0], (4 * hidden, input_size), jnp.float32, -k, k)
    w_hh = jax.random.uniform(keys[1], (4 * hidden, hidden), jnp.float32, -k, k)
    b_ih = jax.random.uniform(keys[2], (4 * hidden,), jnp.float32, -k, k)
    b_hh = jax.random.uniform(keys[3], (4 * hidden,), jnp.float32, -k, k)
    w_fc = jax.random.uniform(keys[4], (output_size, hidden), jnp.float32, -k, k)
    b_fc = jax.random.uniform(keys[5], (output_size,), jnp.float32, -k, k)
    return {"w_ih": w_ih, "w_hh": w_hh, "b_ih": b_ih, "b_hh": b_hh,
            "w_fc": w_fc, "b_fc": b_fc}


def lstm_model_reference(x, params):
    """Pure-JAX reference of the PyTorch forward (for correctness check)."""
    B, T, I = x.shape
    H = params["w_hh"].shape[1]
    h = jnp.zeros((B, H), jnp.float32)
    c = jnp.zeros((B, H), jnp.float32)
    bias = params["b_ih"] + params["b_hh"]
    for t in range(T):
        gates = x[:, t, :] @ params["w_ih"].T + h @ params["w_hh"].T + bias
        i_g = jax.nn.sigmoid(gates[:, 0 * H:1 * H])
        f_g = jax.nn.sigmoid(gates[:, 1 * H:2 * H])
        g_g = jnp.tanh(gates[:, 2 * H:3 * H])
        o_g = jax.nn.sigmoid(gates[:, 3 * H:4 * H])
        c = f_g * c + i_g * g_g
        h = o_g * jnp.tanh(c)
    return h @ params["w_fc"].T + params["b_fc"][None, :]


if __name__ == "__main__":
    jit_fwd = jax.jit(lstm_model_forward, static_argnames=("time_chunk",))

    # Main config matching the module spec.
    B, T, INPUT, HIDDEN, OUT = 2, 8, 4, 32, 1
    key = jax.random.PRNGKey(0)
    kx, kp, kx2, kp2 = jax.random.split(key, 4)
    x = jax.random.normal(kx, (B, T, INPUT), dtype=jnp.float32)
    params = init_params(kp, INPUT, HIDDEN, OUT)

    pred = jax.block_until_ready(jit_fwd(x, params))
    ref = lstm_model_reference(x, params)
    assert pred.shape == (B, OUT)
    assert jnp.allclose(pred, ref, atol=1e-5, rtol=1e-5), (pred, ref)

    # Secondary config exercising padding + masked tail-chunk path (T % Tc != 0).
    B2, T2, I2, H2 = 3, 11, 5, 20
    x2 = jax.random.normal(kx2, (B2, T2, I2), dtype=jnp.float32)
    params2 = init_params(kp2, I2, H2, OUT)
    pred2 = jax.block_until_ready(jit_fwd(x2, params2, time_chunk=4))
    ref2 = lstm_model_reference(x2, params2)
    assert pred2.shape == (B2, OUT)
    assert jnp.allclose(pred2, ref2, atol=1e-5, rtol=1e-5), (pred2, ref2)

    print("KERNEL_OK")
</pallas_src>

<mosaic_0001>
module attributes {stable_mosaic.version = 11 : i64} {
  func.func @_lstm_kernel(%arg0: i32, %arg1: i32, %arg2: memref<8x8x128xf32, #tpu.memory_space<vmem>>, %arg3: memref<128x512xf32, #tpu.memory_space<vmem>>, %arg4: memref<128x512xf32, #tpu.memory_space<vmem>>, %arg5: memref<1x512xf32, #tpu.memory_space<vmem>>, %arg6: memref<8x128xf32, #tpu.memory_space<vmem>>, %arg7: memref<8x128xf32, #tpu.memory_space<vmem>>, %arg8: memref<8x8x512xf32, #tpu.memory_space<vmem>>) attributes {dimension_semantics = [#tpu.dimension_semantics<parallel>, #tpu.dimension_semantics<arbitrary>], iteration_bounds = array<i64: 1, 1>, scalar_prefetch = 0 : i64, scratch_operands = 2 : i64, tpu.core_type = #tpu.core_type<tc>, window_params = [{transform_indices = @transform_0, window_bounds = array<i64: 8, 8, 128>}, {pipeline_mode = #tpu.pipeline_mode<synchronous>, transform_indices = @transform_1, window_bounds = array<i64: 128, 512>}, {pipeline_mode = #tpu.pipeline_mode<synchronous>, transform_indices = @transform_2, window_bounds = array<i64: 128, 512>}, {pipeline_mode = #tpu.pipeline_mode<synchronous>, transform_indices = @transform_3, window_bounds = array<i64: 1, 512>}, {transform_indices = @transform_4, window_bounds = array<i64: 8, 128>}]} {
    %c0_i32 = arith.constant 0 : i32
    %0 = arith.cmpi eq, %arg1, %c0_i32 : i32
    %1 = arith.extui %0 : i1 to i32
    %c0_i32_0 = arith.constant 0 : i32
    %2 = arith.cmpi ne, %1, %c0_i32_0 : i32
    scf.if %2 {
      %cst_83 = arith.constant 0.000000e+00 : f32
      %264 = vector.broadcast %cst_83 : f32 to vector<8x128xf32>
      %c0_84 = arith.constant 0 : index
      %c0_85 = arith.constant 0 : index
      %265 = vector.load %arg6[%c0_84, %c0_85] : memref<8x128xf32, #tpu.memory_space<vmem>>, vector<8x128xf32>
      tpu.vector_store %arg6[%c0_84, %c0_85], %264 {strides = array<i32>} : memref<8x128xf32, #tpu.memory_space<vmem>>, vector<8x128xf32>,
      %cst_86 = arith.constant 0.000000e+00 : f32
      %266 = vector.broadcast %cst_86 : f32 to vector<8x128xf32>
      %c0_87 = arith.constant 0 : index
      %c0_88 = arith.constant 0 : index
      %267 = vector.load %arg7[%c0_87, %c0_88] : memref<8x128xf32, #tpu.memory_space<vmem>>, vector<8x128xf32>
      tpu.vector_store %arg7[%c0_87, %c0_88], %266 {strides = array<i32>} : memref<8x128xf32, #tpu.memory_space<vmem>>, vector<8x128xf32>,
    } else {
    }
    %c0 = arith.constant 0 : index
    %c0_1 = arith.constant 0 : index
    %c0_2 = arith.constant 0 : index
    %3 = vector.load %arg2[%c0, %c0_1, %c0_2] : memref<8x8x128xf32, #tpu.memory_space<vmem>>, vector<8x8x128xf32>
    %4 = vector.shape_cast %3 : vector<8x8x128xf32> to vector<64x128xf32>
    %c0_3 = arith.constant 0 : index
    %c0_4 = arith.constant 0 : index
    %5 = vector.load %arg3[%c0_3, %c0_4] : memref<128x512xf32, #tpu.memory_space<vmem>>, vector<128x512xf32>
    %cst = arith.constant dense<0.000000e+00> : vector<64x512xf32>
    %6 = tpu.matmul %4, %5, %cst {dimension_numbers = #tpu.dot_dimension_numbers<[1], [0], [0], [1], [0, 0, 1, 1], [], []>} : vector<64x128xf32>, vector<128x512xf32>, vector<64x512xf32> -> vector<64x512xf32>
    %c0_5 = arith.constant 0 : index
    %c0_6 = arith.constant 0 : index
    %7 = vector.load %arg5[%c0_5, %c0_6] : memref<1x512xf32, #tpu.memory_space<vmem>>, vector<1x512xf32>
    %8 = vector.broadcast %7 : vector<1x512xf32> to vector<64x512xf32>
    %9 = arith.addf %6, %8 : vector<64x512xf32>
    %10 = vector.shape_cast %9 : vector<64x512xf32> to vector<8x8x512xf32>
    %c0_7 = arith.constant 0 : index
    %c0_8 = arith.constant 0 : index
    %c0_9 = arith.constant 0 : index
    %11 = vector.load %arg8[%c0_7, %c0_8, %c0_9] : memref<8x8x512xf32, #tpu.memory_space<vmem>>, vector<8x8x512xf32>
    tpu.vector_store %arg8[%c0_7, %c0_8, %c0_9], %10 {strides = array<i32>} : memref<8x8x512xf32, #tpu.memory_space<vmem>>, vector<8x8x512xf32>,
    %c0_10 = arith.constant 0 : index
    %c0_11 = arith.constant 0 : index
    %12 = vector.load %arg6[%c0_10, %c0_11] : memref<8x128xf32, #tpu.memory_space<vmem>>, vector<8x128xf32>
    %c0_12 = arith.constant 0 : index
    %c0_13 = arith.constant 0 : index
    %13 = vector.load %arg7[%c0_12, %c0_13] : memref<8x128xf32, #tpu.memory_space<vmem>>, vector<8x128xf32>
    %c0_i32_14 = arith.constant 0 : i32
    %14 = arith.index_cast %c0_i32_14 : i32 to index
    %c0_15 = arith.constant 0 : index
    %c0_16 = arith.constant 0 : index
    %15 = vector.load %arg8[%14, %c0_15, %c0_16] : memref<8x8x512xf32, #tpu.memory_space<vmem>>, vector<1x8x512xf32>
    %16 = vector.shape_cast %15 : vector<1x8x512xf32> to vector<8x512xf32>
    %c0_17 = arith.constant 0 : index
    %c0_18 = arith.constant 0 : index
    %17 = vector.load %arg4[%c0_17, %c0_18] : memref<128x512xf32, #tpu.memory_space<vmem>>, vector<128x512xf32>
    %cst_19 = arith.constant dense<0.000000e+00> : vector<8x512xf32>
    %18 = tpu.matmul %12, %17, %cst_19 {dimension_numbers = #tpu.dot_dimension_numbers<[1], [0], [0], [1], [0, 0, 1, 1], [], []>} : vector<8x128xf32>, vector<128x512xf32>, vector<8x512xf32> -> vector<8x512xf32>
    %19 = arith.addf %16, %18 : vector<8x512xf32>
    %20 = vector.extract_strided_slice %19 {offsets = [0, 0], sizes = [8, 128], strides = [1, 1]} : vector<8x512xf32> to vector<8x128xf32>
    %21 = arith.negf %20 : vector<8x128xf32>
    %22 = math.exp %21 : vector<8x128xf32>
    %cst_20 = arith.constant 1.000000e+00 : f32
    %23 = vector.broadcast %cst_20 : f32 to vector<8x128xf32>
    %24 = arith.addf %23, %22 : vector<8x128xf32>
    %25 = arith.divf %23, %24 : vector<8x128xf32>
    %26 = vector.extract_strided_slice %19 {offsets = [0, 128], sizes = [8, 128], strides = [1, 1]} : vector<8x512xf32> to vector<8x128xf32>
    %27 = arith.negf %26 : vector<8x128xf32>
    %28 = math.exp %27 : vector<8x128xf32>
    %cst_21 = arith.constant 1.000000e+00 : f32
    %29 = vector.broadcast %cst_21 : f32 to vector<8x128xf32>
    %30 = arith.addf %29, %28 : vector<8x128xf32>
    %31 = arith.divf %29, %30 : vector<8x128xf32>
    %32 = vector.extract_strided_slice %19 {offsets = [0, 256], sizes = [8, 128], strides = [1, 1]} : vector<8x512xf32> to vector<8x128xf32>
    %33 = math.tanh %32 : vector<8x128xf32>
    %34 = vector.extract_strided_slice %19 {offsets = [0, 384], sizes = [8, 128], strides = [1, 1]} : vector<8x512xf32> to vector<8x128xf32>
    %35 = arith.negf %34 : vector<8x128xf32>
    %36 = math.exp %35 : vector<8x128xf32>
    %cst_22 = arith.constant 1.000000e+00 : f32
    %37 = vector.broadcast %cst_22 : f32 to vector<8x128xf32>
    %38 = arith.addf %37, %36 : vector<8x128xf32>
    %39 = arith.divf %37, %38 : vector<8x128xf32>
    %40 = arith.mulf %31, %13 : vector<8x128xf32>
    %41 = arith.mulf %25, %33 : vector<8x128xf32>
    %42 = arith.addf %40, %41 : vector<8x128xf32>
    %43 = math.tanh %42 : vector<8x128xf32>
    %44 = arith.mulf %39, %43 : vector<8x128xf32>
    %c1_i32 = arith.constant 1 : i32
    %45 = arith.index_cast %c1_i32 : i32 to index
    %c0_23 = arith.constant 0 : index
    %c0_24 = arith.constant 0 : index
    %46 = vector.load %arg8[%45, %c0_23, %c0_24] : memref<8x8x512xf32, #tpu.memory_space<vmem>>, vector<1x8x512xf32>
    %47 = vector.shape_cast %46 : vector<1x8x512xf32> to vector<8x512xf32>
    %c0_25 = arith.constant 0 : index
    %c0_26 = arith.constant 0 : index
    %48 = vector.load %arg4[%c0_25, %c0_26] : memref<128x512xf32, #tpu.memory_space<vmem>>, vector<128x512xf32>
    %cst_27 = arith.constant dense<0.000000e+00> : vector<8x512xf32>
    %49 = tpu.matmul %44, %48, %cst_27 {dimension_numbers = #tpu.dot_dimension_numbers<[1], [0], [0], [1], [0, 0, 1, 1], [], []>} : vector<8x128xf32>, vector<128x512xf32>, vector<8x512xf32> -> vector<8x512xf32>
    %50 = arith.addf %47, %49 : vector<8x512xf32>
    %51 = vector.extract_strided_slice %50 {offsets = [0, 0], sizes = [8, 128], strides = [1, 1]} : vector<8x512xf32> to vector<8x128xf32>
    %52 = arith.negf %51 : vector<8x128xf32>
    %53 = math.exp %52 : vector<8x128xf32>
    %cst_28 = arith.constant 1.000000e+00 : f32
    %54 = vector.broadcast %cst_28 : f32 to vector<8x128xf32>
    %55 = arith.addf %54, %53 : vector<8x128xf32>
    %56 = arith.divf %54, %55 : vector<8x128xf32>
    %57 = vector.extract_strided_slice %50 {offsets = [0, 128], sizes = [8, 128], strides = [1, 1]} : vector<8x512xf32> to vector<8x128xf32>
    %58 = arith.negf %57 : vector<8x128xf32>
    %59 = math.exp %58 : vector<8x128xf32>
    %cst_29 = arith.constant 1.000000e+00 : f32
    %60 = vector.broadcast %cst_29 : f32 to vector<8x128xf32>
    %61 = arith.addf %60, %59 : vector<8x128xf32>
    %62 = arith.divf %60, %61 : vector<8x128xf32>
    %63 = vector.extract_strided_slice %50 {offsets = [0, 256], sizes = [8, 128], strides = [1, 1]} : vector<8x512xf32> to vector<8x128xf32>
    %64 = math.tanh %63 : vector<8x128xf32>
    %65 = vector.extract_strided_slice %50 {offsets = [0, 384], sizes = [8, 128], strides = [1, 1]} : vector<8x512xf32> to vector<8x128xf32>
    %66 = arith.negf %65 : vector<8x128xf32>
    %67 = math.exp %66 : vector<8x128xf32>
    %cst_30 = arith.constant 1.000000e+00 : f32
    %68 = vector.broadcast %cst_30 : f32 to vector<8x128xf32>
    %69 = arith.addf %68, %67 : vector<8x128xf32>
    %70 = arith.divf %68, %69 : vector<8x128xf32>
    %71 = arith.mulf %62, %42 : vector<8x128xf32>
    %72 = arith.mulf %56, %64 : vector<8x128xf32>
    %73 = arith.addf %71, %72 : vector<8x128xf32>
    %74 = math.tanh %73 : vector<8x128xf32>
    %75 = arith.mulf %70, %74 : vector<8x128xf32>
    %c2_i32 = arith.constant 2 : i32
    %76 = arith.index_cast %c2_i32 : i32 to index
    %c0_31 = arith.constant 0 : index
    %c0_32 = arith.constant 0 : index
    %77 = vector.load %arg8[%76, %c0_31, %c0_32] : memref<8x8x512xf32, #tpu.memory_space<vmem>>, vector<1x8x512xf32>
    %78 = vector.shape_cast %77 : vector<1x8x512xf32> to vector<8x512xf32>
    %c0_33 = arith.constant 0 : index
    %c0_34 = arith.constant 0 : index
    %79 = vector.load %arg4[%c0_33, %c0_34] : memref<128x512xf32, #tpu.memory_space<vmem>>, vector<128x512xf32>
    %cst_35 = arith.constant dense<0.000000e+00> : vector<8x512xf32>
    %80 = tpu.matmul %75, %79, %cst_35 {dimension_numbers = #tpu.dot_dimension_numbers<[1], [0], [0], [1], [0, 0, 1, 1], [], []>} : vector<8x128xf32>, vector<128x512xf32>, vector<8x512xf32> -> vector<8x512xf32>
    %81 = arith.addf %78, %80 : vector<8x512xf32>
    %82 = vector.extract_strided_slice %81 {offsets = [0, 0], sizes = [8, 128], strides = [1, 1]} : vector<8x512xf32> to vector<8x128xf32>
    %83 = arith.negf %82 : vector<8x128xf32>
    %84 = math.exp %83 : vector<8x128xf32>
    %cst_36 = arith.constant 1.000000e+00 : f32
    %85 = vector.broadcast %cst_36 : f32 to vector<8x128xf32>
    %86 = arith.addf %85, %84 : vector<8x128xf32>
    %87 = arith.divf %85, %86 : vector<8x128xf32>
    %88 = vector.extract_strided_slice %81 {offsets = [0, 128], sizes = [8, 128], strides = [1, 1]} : vector<8x512xf32> to vector<8x128xf32>
    %89 = arith.negf %88 : vector<8x128xf32>
    %90 = math.exp %89 : vector<8x128xf32>
    %cst_37 = arith.constant 1.000000e+00 : f32
    %91 = vector.broadcast %cst_37 : f32 to vector<8x128xf32>
    %92 = arith.addf %91, %90 : vector<8x128xf32>
    %93 = arith.divf %91, %92 : vector<8x128xf32>
    %94 = vector.extract_strided_slice %81 {offsets = [0, 256], sizes = [8, 128], strides = [1, 1]} : vector<8x512xf32> to vector<8x128xf32>
    %95 = math.tanh %94 : vector<8x128xf32>
    %96 = vector.extract_strided_slice %81 {offsets = [0, 384], sizes = [8, 128], strides = [1, 1]} : vector<8x512xf32> to vector<8x128xf32>
    %97 = arith.negf %96 : vector<8x128xf32>
    %98 = math.exp %97 : vector<8x128xf32>
    %cst_38 = arith.constant 1.000000e+00 : f32
    %99 = vector.broadcast %cst_38 : f32 to vector<8x128xf32>
    %100 = arith.addf %99, %98 : vector<8x128xf32>
    %101 = arith.divf %99, %100 : vector<8x128xf32>
    %102 = arith.mulf %93, %73 : vector<8x128xf32>
    %103 = arith.mulf %87, %95 : vector<8x128xf32>
    %104 = arith.addf %102, %103 : vector<8x128xf32>
    %105 = math.tanh %104 : vector<8x128xf32>
    %106 = arith.mulf %101, %105 : vector<8x128xf32>
    %c3_i32 = arith.constant 3 : i32
    %107 = arith.index_cast %c3_i32 : i32 to index
    %c0_39 = arith.constant 0 : index
    %c0_40 = arith.constant 0 : index
    %108 = vector.load %arg8[%107, %c0_39, %c0_40] : memref<8x8x512xf32, #tpu.memory_space<vmem>>, vector<1x8x512xf32>
    %109 = vector.shape_cast %108 : vector<1x8x512xf32> to vector<8x512xf32>
    %c0_41 = arith.constant 0 : index
    %c0_42 = arith.constant 0 : index
    %110 = vector.load %arg4[%c0_41, %c0_42] : memref<128x512xf32, #tpu.memory_space<vmem>>, vector<128x512xf32>
    %cst_43 = arith.constant dense<0.000000e+00> : vector<8x512xf32>
    %111 = tpu.matmul %106, %110, %cst_43 {dimension_numbers = #tpu.dot_dimension_numbers<[1], [0], [0], [1], [0, 0, 1, 1], [], []>} : vector<8x128xf32>, vector<128x512xf32>, vector<8x512xf32> -> vector<8x512xf32>
    %112 = arith.addf %109, %111 : vector<8x512xf32>
    %113 = vector.extract_strided_slice %112 {offsets = [0, 0], sizes = [8, 128], strides = [1, 1]} : vector<8x512xf32> to vector<8x128xf32>
    %114 = arith.negf %113 : vector<8x128xf32>
    %115 = math.exp %114 : vector<8x128xf32>
    %cst_44 = arith.constant 1.000000e+00 : f32
    %116 = vector.broadcast %cst_44 : f32 to vector<8x128xf32>
    %117 = arith.addf %116, %115 : vector<8x128xf32>
    %118 = arith.divf %116, %117 : vector<8x128xf32>
    %119 = vector.extract_strided_slice %112 {offsets = [0, 128], sizes = [8, 128], strides = [1, 1]} : vector<8x512xf32> to vector<8x128xf32>
    %120 = arith.negf %119 : vector<8x128xf32>
    %121 = math.exp %120 : vector<8x128xf32>
    %cst_45 = arith.constant 1.000000e+00 : f32
    %122 = vector.broadcast %cst_45 : f32 to vector<8x128xf32>
    %123 = arith.addf %122, %121 : vector<8x128xf32>
    %124 = arith.divf %122, %123 : vector<8x128xf32>
    %125 = vector.extract_strided_slice %112 {offsets = [0, 256], sizes = [8, 128], strides = [1, 1]} : vector<8x512xf32> to vector<8x128xf32>
    %126 = math.tanh %125 : vector<8x128xf32>
    %127 = vector.extract_strided_slice %112 {offsets = [0, 384], sizes = [8, 128], strides = [1, 1]} : vector<8x512xf32> to vector<8x128xf32>
    %128 = arith.negf %127 : vector<8x128xf32>
    %129 = math.exp %128 : vector<8x128xf32>
    %cst_46 = arith.constant 1.000000e+00 : f32
    %130 = vector.broadcast %cst_46 : f32 to vector<8x128xf32>
    %131 = arith.addf %130, %129 : vector<8x128xf32>
    %132 = arith.divf %130, %131 : vector<8x128xf32>
    %133 = arith.mulf %124, %104 : vector<8x128xf32>
    %134 = arith.mulf %118, %126 : vector<8x128xf32>
    %135 = arith.addf %133, %134 : vector<8x128xf32>
    %136 = math.tanh %135 : vector<8x128xf32>
    %137 = arith.mulf %132, %136 : vector<8x128xf32>
    %c4_i32 = arith.constant 4 : i32
    %138 = arith.index_cast %c4_i32 : i32 to index
    %c0_47 = arith.constant 0 : index
    %c0_48 = arith.constant 0 : index
    %139 = vector.load %arg8[%138, %c0_47, %c0_48] : memref<8x8x512xf32, #tpu.memory_space<vmem>>, vector<1x8x512xf32>
    %140 = vector.shape_cast %139 : vector<1x8x512xf32> to vector<8x512xf32>
    %c0_49 = arith.constant 0 : index
    %c0_50 = arith.constant 0 : index
    %141 = vector.load %arg4[%c0_49, %c0_50] : memref<128x512xf32, #tpu.memory_space<vmem>>, vector<128x512xf32>
    %cst_51 = arith.constant dense<0.000000e+00> : vector<8x512xf32>
    %142 = tpu.matmul %137, %141, %cst_51 {dimension_numbers = #tpu.dot_dimension_numbers<[1], [0], [0], [1], [0, 0, 1, 1], [], []>} : vector<8x128xf32>, vector<128x512xf32>, vector<8x512xf32> -> vector<8x512xf32>
    %143 = arith.addf %140, %142 : vector<8x512xf32>
    %144 = vector.extract_strided_slice %143 {offsets = [0, 0], sizes = [8, 128], strides = [1, 1]} : vector<8x512xf32> to vector<8x128xf32>
    %145 = arith.negf %144 : vector<8x128xf32>
    %146 = math.exp %145 : vector<8x128xf32>
    %cst_52 = arith.constant 1.000000e+00 : f32
    %147 = vector.broadcast %cst_52 : f32 to vector<8x128xf32>
    %148 = arith.addf %147, %146 : vector<8x128xf32>
    %149 = arith.divf %147, %148 : vector<8x128xf32>
    %150 = vector.extract_strided_slice %143 {offsets = [0, 128], sizes = [8, 128], strides = [1, 1]} : vector<8x512xf32> to vector<8x128xf32>
    %151 = arith.negf %150 : vector<8x128xf32>
    %152 = math.exp %151 : vector<8x128xf32>
    %cst_53 = arith.constant 1.000000e+00 : f32
    %153 = vector.broadcast %cst_53 : f32 to vector<8x128xf32>
    %154 = arith.addf %153, %152 : vector<8x128xf32>
    %155 = arith.divf %153, %154 : vector<8x128xf32>
    %156 = vector.extract_strided_slice %143 {offsets = [0, 256], sizes = [8, 128], strides = [1, 1]} : vector<8x512xf32> to vector<8x128xf32>
    %157 = math.tanh %156 : vector<8x128xf32>
    %158 = vector.extract_strided_slice %143 {offsets = [0, 384], sizes = [8, 128], strides = [1, 1]} : vector<8x512xf32> to vector<8x128xf32>
    %159 = arith.negf %158 : vector<8x128xf32>
    %160 = math.exp %159 : vector<8x128xf32>
    %cst_54 = arith.constant 1.000000e+00 : f32
    %161 = vector.broadcast %cst_54 : f32 to vector<8x128xf32>
    %162 = arith.addf %161, %160 : vector<8x128xf32>
    %163 = arith.divf %161, %162 : vector<8x128xf32>
    %164 = arith.mulf %155, %135 : vector<8x128xf32>
    %165 = arith.mulf %149, %157 : vector<8x128xf32>
    %166 = arith.addf %164, %165 : vector<8x128xf32>
    %167 = math.tanh %166 : vector<8x128xf32>
    %168 = arith.mulf %163, %167 : vector<8x128xf32>
    %c5_i32 = arith.constant 5 : i32
    %169 = arith.index_cast %c5_i32 : i32 to index
    %c0_55 = arith.constant 0 : index
    %c0_56 = arith.constant 0 : index
    %170 = vector.load %arg8[%169, %c0_55, %c0_56] : memref<8x8x512xf32, #tpu.memory_space<vmem>>, vector<1x8x512xf32>
    %171 = vector.shape_cast %170 : vector<1x8x512xf32> to vector<8x512xf32>
    %c0_57 = arith.constant 0 : index
    %c0_58 = arith.constant 0 : index
    %172 = vector.load %arg4[%c0_57, %c0_58] : memref<128x512xf32, #tpu.memory_space<vmem>>, vector<128x512xf32>
    %cst_59 = arith.constant dense<0.000000e+00> : vector<8x512xf32>
    %173 = tpu.matmul %168, %172, %cst_59 {dimension_numbers = #tpu.dot_dimension_numbers<[1], [0], [0], [1], [0, 0, 1, 1], [], []>} : vector<8x128xf32>, vector<128x512xf32>, vector<8x512xf32> -> vector<8x512xf32>
    %174 = arith.addf %171, %173 : vector<8x512xf32>
    %175 = vector.extract_strided_slice %174 {offsets = [0, 0], sizes = [8, 128], strides = [1, 1]} : vector<8x512xf32> to vector<8x128xf32>
    %176 = arith.negf %175 : vector<8x128xf32>
    %177 = math.exp %176 : vector<8x128xf32>
    %cst_60 = arith.constant 1.000000e+00 : f32
    %178 = vector.broadcast %cst_60 : f32 to vector<8x128xf32>
    %179 = arith.addf %178, %177 : vector<8x128xf32>
    %180 = arith.divf %178, %179 : vector<8x128xf32>
    %181 = vector.extract_strided_slice %174 {offsets = [0, 128], sizes = [8, 128], strides = [1, 1]} : vector<8x512xf32> to vector<8x128xf32>
    %182 = arith.negf %181 : vector<8x128xf32>
    %183 = math.exp %182 : vector<8x128xf32>
    %cst_61 = arith.constant 1.000000e+00 : f32
    %184 = vector.broadcast %cst_61 : f32 to vector<8x128xf32>
    %185 = arith.addf %184, %183 : vector<8x128xf32>
    %186 = arith.divf %184, %185 : vector<8x128xf32>
    %187 = vector.extract_strided_slice %174 {offsets = [0, 256], sizes = [8, 128], strides = [1, 1]} : vector<8x512xf32> to vector<8x128xf32>
    %188 = math.tanh %187 : vector<8x128xf32>
    %189 = vector.extract_strided_slice %174 {offsets = [0, 384], sizes = [8, 128], strides = [1, 1]} : vector<8x512xf32> to vector<8x128xf32>
    %190 = arith.negf %189 : vector<8x128xf32>
    %191 = math.exp %190 : vector<8x128xf32>
    %cst_62 = arith.constant 1.000000e+00 : f32
    %192 = vector.broadcast %cst_62 : f32 to vector<8x128xf32>
    %193 = arith.addf %192, %191 : vector<8x128xf32>
    %194 = arith.divf %192, %193 : vector<8x128xf32>
    %195 = arith.mulf %186, %166 : vector<8x128xf32>
    %196 = arith.mulf %180, %188 : vector<8x128xf32>
    %197 = arith.addf %195, %196 : vector<8x128xf32>
    %198 = math.tanh %197 : vector<8x128xf32>
    %199 = arith.mulf %194, %198 : vector<8x128xf32>
    %c6_i32 = arith.constant 6 : i32
    %200 = arith.index_cast %c6_i32 : i32 to index
    %c0_63 = arith.constant 0 : index
    %c0_64 = arith.constant 0 : index
    %201 = vector.load %arg8[%200, %c0_63, %c0_64] : memref<8x8x512xf32, #tpu.memory_space<vmem>>, vector<1x8x512xf32>
    %202 = vector.shape_cast %201 : vector<1x8x512xf32> to vector<8x512xf32>
    %c0_65 = arith.constant 0 : index
    %c0_66 = arith.constant 0 : index
    %203 = vector.load %arg4[%c0_65, %c0_66] : memref<128x512xf32, #tpu.memory_space<vmem>>, vector<128x512xf32>
    %cst_67 = arith.constant dense<0.000000e+00> : vector<8x512xf32>
    %204 = tpu.matmul %199, %203, %cst_67 {dimension_numbers = #tpu.dot_dimension_numbers<[1], [0], [0], [1], [0, 0, 1, 1], [], []>} : vector<8x128xf32>, vector<128x512xf32>, vector<8x512xf32> -> vector<8x512xf32>
    %205 = arith.addf %202, %204 : vector<8x512xf32>
    %206 = vector.extract_strided_slice %205 {offsets = [0, 0], sizes = [8, 128], strides = [1, 1]} : vector<8x512xf32> to vector<8x128xf32>
    %207 = arith.negf %206 : vector<8x128xf32>
    %208 = math.exp %207 : vector<8x128xf32>
    %cst_68 = arith.constant 1.000000e+00 : f32
    %209 = vector.broadcast %cst_68 : f32 to vector<8x128xf32>
    %210 = arith.addf %209, %208 : vector<8x128xf32>
    %211 = arith.divf %209, %210 : vector<8x128xf32>
    %212 = vector.extract_strided_slice %205 {offsets = [0, 128], sizes = [8, 128], strides = [1, 1]} : vector<8x512xf32> to vector<8x128xf32>
    %213 = arith.negf %212 : vector<8x128xf32>
    %214 = math.exp %213 : vector<8x128xf32>
    %cst_69 = arith.constant 1.000000e+00 : f32
    %215 = vector.broadcast %cst_69 : f32 to vector<8x128xf32>
    %216 = arith.addf %215, %214 : vector<8x128xf32>
    %217 = arith.divf %215, %216 : vector<8x128xf32>
    %218 = vector.extract_strided_slice %205 {offsets = [0, 256], sizes = [8, 128], strides = [1, 1]} : vector<8x512xf32> to vector<8x128xf32>
    %219 = math.tanh %218 : vector<8x128xf32>
    %220 = vector.extract_strided_slice %205 {offsets = [0, 384], sizes = [8, 128], strides = [1, 1]} : vector<8x512xf32> to vector<8x128xf32>
    %221 = arith.negf %220 : vector<8x128xf32>
    %222 = math.exp %221 : vector<8x128xf32>
    %cst_70 = arith.constant 1.000000e+00 : f32
    %223 = vector.broadcast %cst_70 : f32 to vector<8x128xf32>
    %224 = arith.addf %223, %222 : vector<8x128xf32>
    %225 = arith.divf %223, %224 : vector<8x128xf32>
    %226 = arith.mulf %217, %197 : vector<8x128xf32>
    %227 = arith.mulf %211, %219 : vector<8x128xf32>
    %228 = arith.addf %226, %227 : vector<8x128xf32>
    %229 = math.tanh %228 : vector<8x128xf32>
    %230 = arith.mulf %225, %229 : vector<8x128xf32>
    %c7_i32 = arith.constant 7 : i32
    %231 = arith.index_cast %c7_i32 : i32 to index
    %c0_71 = arith.constant 0 : index
    %c0_72 = arith.constant 0 : index
    %232 = vector.load %arg8[%231, %c0_71, %c0_72] : memref<8x8x512xf32, #tpu.memory_space<vmem>>, vector<1x8x512xf32>
    %233 = vector.shape_cast %232 : vector<1x8x512xf32> to vector<8x512xf32>
    %c0_73 = arith.constant 0 : index
    %c0_74 = arith.constant 0 : index
    %234 = vector.load %arg4[%c0_73, %c0_74] : memref<128x512xf32, #tpu.memory_space<vmem>>, vector<128x512xf32>
    %cst_75 = arith.constant dense<0.000000e+00> : vector<8x512xf32>
    %235 = tpu.matmul %230, %234, %cst_75 {dimension_numbers = #tpu.dot_dimension_numbers<[1], [0], [0], [1], [0, 0, 1, 1], [], []>} : vector<8x128xf32>, vector<128x512xf32>, vector<8x512xf32> -> vector<8x512xf32>
    %236 = arith.addf %233, %235 : vector<8x512xf32>
    %237 = vector.extract_strided_slice %236 {offsets = [0, 0], sizes = [8, 128], strides = [1, 1]} : vector<8x512xf32> to vector<8x128xf32>
    %238 = arith.negf %237 : vector<8x128xf32>
    %239 = math.exp %238 : vector<8x128xf32>
    %cst_76 = arith.constant 1.000000e+00 : f32
    %240 = vector.broadcast %cst_76 : f32 to vector<8x128xf32>
    %241 = arith.addf %240, %239 : vector<8x128xf32>
    %242 = arith.divf %240, %241 : vector<8x128xf32>
    %243 = vector.extract_strided_slice %236 {offsets = [0, 128], sizes = [8, 128], strides = [1, 1]} : vector<8x512xf32> to vector<8x128xf32>
    %244 = arith.negf %243 : vector<8x128xf32>
    %245 = math.exp %244 : vector<8x128xf32>
    %cst_77 = arith.constant 1.000000e+00 : f32
    %246 = vector.broadcast %cst_77 : f32 to vector<8x128xf32>
    %247 = arith.addf %246, %245 : vector<8x128xf32>
    %248 = arith.divf %246, %247 : vector<8x128xf32>
    %249 = vector.extract_strided_slice %236 {offsets = [0, 256], sizes = [8, 128], strides = [1, 1]} : vector<8x512xf32> to vector<8x128xf32>
    %250 = math.tanh %249 : vector<8x128xf32>
    %251 = vector.extract_strided_slice %236 {offsets = [0, 384], sizes = [8, 128], strides = [1, 1]} : vector<8x512xf32> to vector<8x128xf32>
    %252 = arith.negf %251 : vector<8x128xf32>
    %253 = math.exp %252 : vector<8x128xf32>
    %cst_78 = arith.constant 1.000000e+00 : f32
    %254 = vector.broadcast %cst_78 : f32 to vector<8x128xf32>
    %255 = arith.addf %254, %253 : vector<8x128xf32>
    %256 = arith.divf %254, %255 : vector<8x128xf32>
    %257 = arith.mulf %248, %228 : vector<8x128xf32>
    %258 = arith.mulf %242, %250 : vector<8x128xf32>
    %259 = arith.addf %257, %258 : vector<8x128xf32>
    %260 = math.tanh %259 : vector<8x128xf32>
    %261 = arith.mulf %256, %260 : vector<8x128xf32>
    %c8_i32 = arith.constant 8 : i32
    %c0_79 = arith.constant 0 : index
    %c0_80 = arith.constant 0 : index
    %262 = vector.load %arg6[%c0_79, %c0_80] : memref<8x128xf32, #tpu.memory_space<vmem>>, vector<8x128xf32>
    tpu.vector_store %arg6[%c0_79, %c0_80], %261 {strides = array<i32>} : memref<8x128xf32, #tpu.memory_space<vmem>>, vector<8x128xf32>,
    %c0_81 = arith.constant 0 : index
    %c0_82 = arith.constant 0 : index
    %263 = vector.load %arg7[%c0_81, %c0_82] : memref<8x128xf32, #tpu.memory_space<vmem>>, vector<8x128xf32>
    tpu.vector_store %arg7[%c0_81, %c0_82], %259 {strides = array<i32>} : memref<8x128xf32, #tpu.memory_space<vmem>>, vector<8x128xf32>,
    return
  }
  func.func @transform_0(%arg0: i32, %arg1: i32) -> (i32, i32, i32) {
    %c0_i32 = arith.constant 0 : i32
    %c0_i32_0 = arith.constant 0 : i32
    return %arg1, %arg0, %c0_i32 : i32, i32, i32
  }
  func.func @transform_1(%arg0: i32, %arg1: i32) -> (i32, i32) {
    %c0_i32 = arith.constant 0 : i32
    %c0_i32_0 = arith.constant 0 : i32
    %c0_i32_1 = arith.constant 0 : i32
    return %c0_i32, %c0_i32_0 : i32, i32
  }
  func.func @transform_2(%arg0: i32, %arg1: i32) -> (i32, i32) {
    %c0_i32 = arith.constant 0 : i32
    %c0_i32_0 = arith.constant 0 : i32
    %c0_i32_1 = arith.constant 0 : i32
    return %c0_i32, %c0_i32_0 : i32, i32
  }
  func.func @transform_3(%arg0: i32, %arg1: i32) -> (i32, i32) {
    %c0_i32 = arith.constant 0 : i32
    %c0_i32_0 = arith.constant 0 : i32
    %c0_i32_1 = arith.constant 0 : i32
    return %c0_i32, %c0_i32_0 : i32, i32
  }
  func.func @transform_4(%arg0: i32, %arg1: i32) -> (i32, i32) {
    %c0_i32 = arith.constant 0 : i32
    %c0_i32_0 = arith.constant 0 : i32
    return %arg0, %c0_i32 : i32, i32
  }
}

</mosaic_0001>

<bundles_post_ra>
// kernel: lstm_model_forward.1
= control target key start
LH: loop header
LB: loop body
LE: loop exit
PB: predicated region body
PF: predicated region fallthrough
CT: control target
= control target key end

     0   :  { %v3642_v3 = vmov 0.0   ;;  %s3637_s1 = inlined_call_operand.vmem [shape: f32[128,512], index: 1, kind: input, shape index: {}]   ;;  %s3638_s0 = inlined_call_operand.vmem [shape: f32[8,8,128], index: 0, kind: input, shape index: {}]   ;;  %s3639_s2 = inlined_call_operand.vmem [shape: f32[128,512], index: 2, kind: input, shape index: {}]   ;;  %s3640_s3 = inlined_call_operand.vmem [shape: f32[1,512], index: 3, kind: input, shape index: {}]   ;;  %s3641_s4 = inlined_call_operand.vmem [shape: f32[8,128], index: 4, kind: output, shape index: {}]  }
   0x1   :  { %v92_v0 = vld [vmem:[%s3637_s1 + $0x1e8] sm:$0xff]  ;;  %v94_v1 = vld [vmem:[%s3637_s1 + $0x1f8] sm:$0xff]  ;;  %v91_v2 = vld [vmem:[%s3637_s1 + $0x1e0] sm:$0xff]  ;;  %181 = vmatprep.mubr.f32.mxu0 %v3642_v3  ;;  %294 = vmatprep.mubr.f32.mxu1 %v3642_v3 }
   0x2   :  { %117 = vmatprep.subr.mxu0 %v92_v0  ;;  %230 = vmatprep.subr.mxu1 %v94_v1  ;;  %v93_v4 = vld [vmem:[%s3637_s1 + $0x1f0] sm:$0xff]  ;;  %v88_v5 = vld [vmem:[%s3637_s1 + $0x1c8] sm:$0xff]  ;;  %v90_v6 = vld [vmem:[%s3637_s1 + $0x1d8] sm:$0xff] }
   0x3   :  { %118 = vmatpush1.msra.mxu0 %v91_v2  ;;  %231 = vmatpush1.msra.mxu1 %v93_v4  ;;  %v87_v7 = vld [vmem:[%s3637_s1 + $0x1c0] sm:$0xff]  ;;  %v89_v8 = vld [vmem:[%s3637_s1 + $0x1d0] sm:$0xff]  ;;  %v84_v9 = vld [vmem:[%s3637_s1 + $0x1a8] sm:$0xff] }
   0x4   :  { %119 = vmatprep.subr.mxu0 %v88_v5  ;;  %232 = vmatprep.subr.mxu1 %v90_v6  ;;  %v86_v10 = vld [vmem:[%s3637_s1 + $0x1b8] sm:$0xff]  ;;  %v83_v11 = vld [vmem:[%s3637_s1 + $0x1a0] sm:$0xff]  ;;  %v85_v12 = vld [vmem:[%s3637_s1 + $0x1b0] sm:$0xff] }
   0x5   :  { %120 = vmatpush1.msra.mxu0 %v87_v7  ;;  %233 = vmatpush1.msra.mxu1 %v89_v8  ;;  %v80_v13 = vld [vmem:[%s3637_s1 + $0x188] sm:$0xff]  ;;  %v82_v14 = vld [vmem:[%s3637_s1 + $0x198] sm:$0xff]  ;;  %v79_v15 = vld [vmem:[%s3637_s1 + $0x180] sm:$0xff] }
   0x6   :  { %121 = vmatprep.subr.mxu0 %v84_v9  ;;  %234 = vmatprep.subr.mxu1 %v86_v10  ;;  %v81_v16 = vld [vmem:[%s3637_s1 + $0x190] sm:$0xff]  ;;  %v76_v17 = vld [vmem:[%s3637_s1 + $0x168] sm:$0xff]  ;;  %v78_v18 = vld [vmem:[%s3637_s1 + $0x178] sm:$0xff] }
   0x7   :  { %122 = vmatpush1.msra.mxu0 %v83_v11  ;;  %235 = vmatpush1.msra.mxu1 %v85_v12  ;;  %v75_v19 = vld [vmem:[%s3637_s1 + $0x160] sm:$0xff]  ;;  %v77_v20 = vld [vmem:[%s3637_s1 + $0x170] sm:$0xff]  ;;  %v72_v21 = vld [vmem:[%s3637_s1 + $0x148] sm:$0xff] }
   0x8   :  { %123 = vmatprep.subr.mxu0 %v80_v13  ;;  %236 = vmatprep.subr.mxu1 %v82_v14  ;;  %v74_v22 = vld [vmem:[%s3637_s1 + $0x158] sm:$0xff]  ;;  %v71_v23 = vld [vmem:[%s3637_s1 + $0x140] sm:$0xff]  ;;  %v73_v24 = vld [vmem:[%s3637_s1 + $0x150] sm:$0xff] }
   0x9   :  { %124 = vmatpush1.msra.mxu0 %v79_v15  ;;  %237 = vmatpush1.msra.mxu1 %v81_v16  ;;  %v68_v25 = vld [vmem:[%s3637_s1 + $0x128] sm:$0xff]  ;;  %v70_v26 = vld [vmem:[%s3637_s1 + $0x138] sm:$0xff]  ;;  %v67_v27 = vld [vmem:[%s3637_s1 + $0x120] sm:$0xff] }
   0xa   :  { %125 = vmatprep.subr.mxu0 %v76_v17  ;;  %238 = vmatprep.subr.mxu1 %v78_v18  ;;  %v69_v28 = vld [vmem:[%s3637_s1 + $0x130] sm:$0xff]  ;;  %v64_v29 = vld [vmem:[%s3637_s1 + $0x108] sm:$0xff]  ;;  %v66_v30 = vld [vmem:[%s3637_s1 + $0x118] sm:$0xff] }
   0xb   :  { %126 = vmatpush1.msra.mxu0 %v75_v19  ;;  %239 = vmatpush1.msra.mxu1 %v77_v20  ;;  %v63_v31 = vld [vmem:[%s3637_s1 + $0x100] sm:$0xff]  ;;  %v65_v32 = vld [vmem:[%s3637_s1 + $0x110] sm:$0xff]  ;;  %v60_v33 = vld [vmem:[%s3637_s1 + $0xe8] sm:$0xff] }
   0xc   :  { %127 = vmatprep.subr.mxu0 %v72_v21  ;;  %240 = vmatprep.subr.mxu1 %v74_v22  ;;  %v62_v34 = vld [vmem:[%s3637_s1 + $0xf8] sm:$0xff]  ;;  %v59_v35 = vld [vmem:[%s3637_s1 + $0xe0] sm:$0xff]  ;;  %v61_v36 = vld [vmem:[%s3637_s1 + $0xf0] sm:$0xff] }
   0xd   :  { %128 = vmatpush1.msra.mxu0 %v71_v23  ;;  %241 = vmatpush1.msra.mxu1 %v73_v24  ;;  %v56_v37 = vld [vmem:[%s3637_s1 + $0xc8] sm:$0xff]  ;;  %v58_v38 = vld [vmem:[%s3637_s1 + $0xd8] sm:$0xff]  ;;  %v55_v39 = vld [vmem:[%s3637_s1 + $0xc0] sm:$0xff] }
   0xe   :  { %129 = vmatprep.subr.mxu0 %v68_v25  ;;  %242 = vmatprep.subr.mxu1 %v70_v26  ;;  %v57_v40 = vld [vmem:[%s3637_s1 + $0xd0] sm:$0xff]  ;;  %v52_v41 = vld [vmem:[%s3637_s1 + $0xa8] sm:$0xff]  ;;  %v54_v42 = vld [vmem:[%s3637_s1 + $0xb8] sm:$0xff] }
   0xf   :  { %130 = vmatpush1.msra.mxu0 %v67_v27  ;;  %243 = vmatpush1.msra.mxu1 %v69_v28  ;;  %v51_v43 = vld [vmem:[%s3637_s1 + $0xa0] sm:$0xff]  ;;  %v53_v44 = vld [vmem:[%s3637_s1 + $0xb0] sm:$0xff]  ;;  %v48_v45 = vld [vmem:[%s3637_s1 + $0x88] sm:$0xff] }
  0x10   :  { %131 = vmatprep.subr.mxu0 %v64_v29  ;;  %244 = vmatprep.subr.mxu1 %v66_v30  ;;  %v50_v46 = vld [vmem:[%s3637_s1 + $0x98] sm:$0xff]  ;;  %v47_v47 = vld [vmem:[%s3637_s1 + $0x80] sm:$0xff]  ;;  %v49_v48 = vld [vmem:[%s3637_s1 + $0x90] sm:$0xff] }
  0x11   :  { %132 = vmatpush1.msra.mxu0 %v63_v31  ;;  %245 = vmatpush1.msra.mxu1 %v65_v32  ;;  %v44_v49 = vld [vmem:[%s3637_s1 + $0x68] sm:$0xff]  ;;  %v46_v50 = vld [vmem:[%s3637_s1 + $0x78] sm:$0xff]  ;;  %v43_v51 = vld [vmem:[%s3637_s1 + $0x60] sm:$0xff] }
  0x12   :  { %133 = vmatprep.subr.mxu0 %v60_v33  ;;  %246 = vmatprep.subr.mxu1 %v62_v34  ;;  %v45_v52 = vld [vmem:[%s3637_s1 + $0x70] sm:$0xff]  ;;  %v40_v53 = vld [vmem:[%s3637_s1 + $0x48] sm:$0xff]  ;;  %v42_v54 = vld [vmem:[%s3637_s1 + $0x58] sm:$0xff] }
  0x13   :  { %134 = vmatpush1.msra.mxu0 %v59_v35  ;;  %247 = vmatpush1.msra.mxu1 %v61_v36  ;;  %v39_v55 = vld [vmem:[%s3637_s1 + $0x40] sm:$0xff]  ;;  %v41_v56 = vld [vmem:[%s3637_s1 + $0x50] sm:$0xff]  ;;  %v36_v57 = vld [vmem:[%s3637_s1 + $0x28] sm:$0xff] }
  0x14   :  { %135 = vmatprep.subr.mxu0 %v56_v37  ;;  %248 = vmatprep.subr.mxu1 %v58_v38  ;;  %v38_v58 = vld [vmem:[%s3637_s1 + $0x38] sm:$0xff]  ;;  %v35_v59 = vld [vmem:[%s3637_s1 + $0x20] sm:$0xff]  ;;  %v37_v60 = vld [vmem:[%s3637_s1 + $0x30] sm:$0xff] }
  0x15   :  { %136 = vmatpush1.msra.mxu0 %v55_v39  ;;  %249 = vmatpush1.msra.mxu1 %v57_v40  ;;  %v32_v61 = vld [vmem:[%s3637_s1 + $0x8] sm:$0xff]  ;;  %v34_v62 = vld [vmem:[%s3637_s1 + $0x18] sm:$0xff]  ;;  %v31_v63 = vld [vmem:[%s3637_s1] sm:$0xff] }
  0x16   :  { %137 = vmatprep.subr.mxu0 %v52_v41  ;;  %250 = vmatprep.subr.mxu1 %v54_v42  ;;  %v33_v0 = vld [vmem:[%s3637_s1 + $0x10] sm:$0xff]  ;;  %v23_v1 = vld [vmem:[%s3638_s0] sm:$0xff]  ;;  %v2289_v2 = vld [vmem:[%s3639_s2 + $0x1e8] sm:$0xff] }
  0x17   :  { %138 = vmatpush1.msra.mxu0 %v51_v43  ;;  %251 = vmatpush1.msra.mxu1 %v53_v44  ;;  %3730 = vst [vmem:[#allocation4_spill] sm:$0xff] %v2289_v2  ;;  %v2294_v4 = vld [vmem:[%s3639_s2 + $0x1f8] sm:$0xff]  ;;  %v2299_v5 = vld [vmem:[%s3639_s2 + $0x1e0] sm:$0xff]  ;;  %v2304_v6 = vld [vmem:[%s3639_s2 + $0x1f0] sm:$0xff] }
  0x18   :  { %139 = vmatprep.subr.mxu0 %v48_v45  ;;  %252 = vmatprep.subr.mxu1 %v50_v46  ;;  %3731 = vst [vmem:[#allocation5_spill] sm:$0xff] %v2294_v4  ;;  %v2309_v7 = vld [vmem:[%s3639_s2 + $0x1c8] sm:$0xff]  ;;  %v2314_v8 = vld [vmem:[%s3639_s2 + $0x1d8] sm:$0xff]  ;;  %v2323_v9 = vld [vmem:[%s3639_s2 + $0x1c0] sm:$0xff] }
  0x19   :  { %140 = vmatpush1.msra.mxu0 %v47_v47  ;;  %253 = vmatpush1.msra.mxu1 %v49_v48  ;;  %v2328_v10 = vld [vmem:[%s3639_s2 + $0x1d0] sm:$0xff]  ;;  %v24_v11 = vld [vmem:[%s3638_s0 + $0x8] sm:$0xff]  ;;  %v2345_v13 = vld [vmem:[%s3639_s2 + $0x1b8] sm:$0xff] }
  0x1a   :  { %141 = vmatprep.subr.mxu0 %v44_v49  ;;  %254 = vmatprep.subr.mxu1 %v46_v50  ;;  %v2340_v12 = vld [vmem:[%s3639_s2 + $0x1a8] sm:$0xff]  ;;  %v2352_v14 = vld [vmem:[%s3639_s2 + $0x1a0] sm:$0xff]  ;;  %v2357_v15 = vld [vmem:[%s3639_s2 + $0x1b0] sm:$0xff] }
  0x1b   :  { %142 = vmatpush1.msra.mxu0 %v43_v51  ;;  %255 = vmatpush1.msra.mxu1 %v45_v52  ;;  %v2362_v16 = vld [vmem:[%s3639_s2 + $0x188] sm:$0xff]  ;;  %v2367_v17 = vld [vmem:[%s3639_s2 + $0x198] sm:$0xff]  ;;  %v2376_v18 = vld [vmem:[%s3639_s2 + $0x180] sm:$0xff] }
  0x1c   :  { %143 = vmatprep.subr.mxu0 %v40_v53  ;;  %256 = vmatprep.subr.mxu1 %v42_v54  ;;  %v2381_v19 = vld [vmem:[%s3639_s2 + $0x190] sm:$0xff]  ;;  %v2393_v21 = vld [vmem:[%s3639_s2 + $0x168] sm:$0xff]  ;;  %v2398_v22 = vld [vmem:[%s3639_s2 + $0x178] sm:$0xff] }
  0x1d   :  { %144 = vmatpush1.msra.mxu0 %v39_v55  ;;  %257 = vmatpush1.msra.mxu1 %v41_v56  ;;  %v25_v20 = vld [vmem:[%s3638_s0 + $0x10] sm:$0xff]  ;;  %v2405_v23 = vld [vmem:[%s3639_s2 + $0x160] sm:$0xff]  ;;  %v2415_v25 = vld [vmem:[%s3639_s2 + $0x148] sm:$0xff] }
  0x1e   :  { %145 = vmatprep.subr.mxu0 %v36_v57  ;;  %258 = vmatprep.subr.mxu1 %v38_v58  ;;  %v2410_v24 = vld [vmem:[%s3639_s2 + $0x170] sm:$0xff]  ;;  %v2420_v26 = vld [vmem:[%s3639_s2 + $0x158] sm:$0xff]  ;;  %v2429_v27 = vld [vmem:[%s3639_s2 + $0x140] sm:$0xff] }
  0x1f   :  { %146 = vmatpush1.msra.mxu0 %v35_v59  ;;  %259 = vmatpush1.msra.mxu1 %v37_v60  ;;  %v2434_v28 = vld [vmem:[%s3639_s2 + $0x150] sm:$0xff]  ;;  %v26_v29 = vld [vmem:[%s3638_s0 + $0x18] sm:$0xff]  ;;  %v2446_v30 = vld [vmem:[%s3639_s2 + $0x128] sm:$0xff] }
  0x20   :  { %147 = vmatprep.subr.mxu0 %v32_v61  ;;  %260 = vmatprep.subr.mxu1 %v34_v62  ;;  %v2451_v31 = vld [vmem:[%s3639_s2 + $0x138] sm:$0xff]  ;;  %v2458_v32 = vld [vmem:[%s3639_s2 + $0x120] sm:$0xff]  ;;  %v2463_v33 = vld [vmem:[%s3639_s2 + $0x130] sm:$0xff] }
  0x21   :  { %148 = vmatpush1.msra.mxu0 %v31_v63  ;;  %261 = vmatpush1.msra.mxu1 %v33_v0  ;;  %v2468_v34 = vld [vmem:[%s3639_s2 + $0x108] sm:$0xff]  ;;  %v2473_v35 = vld [vmem:[%s3639_s2 + $0x118] sm:$0xff]  ;;  %v2482_v36 = vld [vmem:[%s3639_s2 + $0x100] sm:$0xff] }
  0x22   :  { %182 = vmatmul.mubr.f32.vlgmr.msra.gmra.mxu0 %v23_v1  ;;  %295 = vmatmul.mubr.f32.vlgmr.msra.gmra.mxu1 %v23_v1  ;;  %v2487_v37 = vld [vmem:[%s3639_s2 + $0x110] sm:$0xff]  ;;  %v27_v38 = vld [vmem:[%s3638_s0 + $0x20] sm:$0xff]  ;;  %v2499_v39 = vld [vmem:[%s3639_s2 + $0xe8] sm:$0xff] }
  0x23   :  { %445 = vmatprep.subr.mxu0 %v2289_v2  ;;  %516 = vmatprep.subr.mxu1 %v2294_v4  ;;  %v2504_v40 = vld [vmem:[%s3639_s2 + $0xf8] sm:$0xff]  ;;  %v2511_v41 = vld [vmem:[%s3639_s2 + $0xe0] sm:$0xff]  ;;  %v2516_v42 = vld [vmem:[%s3639_s2 + $0xf0] sm:$0xff] }
  0x24   :  { %446 = vmatpush1.msra.mxu0 %v2299_v5  ;;  %517 = vmatpush1.msra.mxu1 %v2304_v6  ;;  %v2521_v43 = vld [vmem:[%s3639_s2 + $0xc8] sm:$0xff]  ;;  %v2526_v44 = vld [vmem:[%s3639_s2 + $0xd8] sm:$0xff]  ;;  %v2535_v45 = vld [vmem:[%s3639_s2 + $0xc0] sm:$0xff] }
  0x25   :  { %447 = vmatprep.subr.mxu0 %v2309_v7  ;;  %518 = vmatprep.subr.mxu1 %v2314_v8  ;;  %v2540_v46 = vld [vmem:[%s3639_s2 + $0xd0] sm:$0xff]  ;;  %v28_v47 = vld [vmem:[%s3638_s0 + $0x28] sm:$0xff]  ;;  %v2557_v49 = vld [vmem:[%s3639_s2 + $0xb8] sm:$0xff] }
  0x26   :  { %187 = vmatprep.mubr.f32.mxu0 %v3642_v3  ;;  %300 = vmatprep.mubr.f32.mxu1 %v3642_v3  ;;  %v2552_v48 = vld [vmem:[%s3639_s2 + $0xa8] sm:$0xff]  ;;  %v2564_v50 = vld [vmem:[%s3639_s2 + $0xa0] sm:$0xff]  ;;  %v2569_v51 = vld [vmem:[%s3639_s2 + $0xb0] sm:$0xff] }
  0x27   :  { %448 = vmatpush1.msra.mxu0 %v2323_v9  ;;  %519 = vmatpush1.msra.mxu1 %v2328_v10  ;;  %v2574_v52 = vld [vmem:[%s3639_s2 + $0x88] sm:$0xff]  ;;  %v2579_v53 = vld [vmem:[%s3639_s2 + $0x98] sm:$0xff]  ;;  %v2588_v54 = vld [vmem:[%s3639_s2 + $0x80] sm:$0xff] }
  0x28   :  { %188 = vmatmul.mubr.f32.gmra.mxu0 %v24_v11  ;;  %301 = vmatmul.mubr.f32.gmra.mxu1 %v24_v11  ;;  %3732 = vst [vmem:[#allocation6_spill] sm:$0xff] %v2574_v52  ;;  %3733 = vst [vmem:[#allocation7_spill] sm:$0xff] %v2579_v53  ;;  %v2593_v55 = vld [vmem:[%s3639_s2 + $0x90] sm:$0xff]  ;;  %v2605_v57 = vld [vmem:[%s3639_s2 + $0x68] sm:$0xff] }
  0x29   :  { %449 = vmatprep.subr.mxu0 %v2340_v12  ;;  %520 = vmatprep.subr.mxu1 %v2345_v13  ;;  %3734 = vst [vmem:[#allocation8_spill] sm:$0xff] %v2588_v54  ;;  %3735 = vst [vmem:[#allocation9_spill] sm:$0xff] %v2593_v55  ;;  %v29_v56 = vld [vmem:[%s3638_s0 + $0x30] sm:$0xff]  ;;  %v2610_v58 = vld [vmem:[%s3639_s2 + $0x78] sm:$0xff] }
  0x2a   :  { %450 = vmatpush1.msra.mxu0 %v2352_v14  ;;  %521 = vmatpush1.msra.mxu1 %v2357_v15  ;;  %3736 = vst [vmem:[#allocation10_spill] sm:$0xff] %v2605_v57  ;;  %3737 = vst [vmem:[#allocation11_spill] sm:$0xff] %v2610_v58  ;;  %v2617_v59 = vld [vmem:[%s3639_s2 + $0x60] sm:$0xff]  ;;  %v2622_v60 = vld [vmem:[%s3639_s2 + $0x70] sm:$0xff] }
  0x2b   :  { %451 = vmatprep.subr.mxu0 %v2362_v16  ;;  %522 = vmatprep.subr.mxu1 %v2367_v17  ;;  %3738 = vst [vmem:[#allocation12_spill] sm:$0xff] %v2617_v59  ;;  %3739 = vst [vmem:[#allocation13_spill] sm:$0xff] %v2622_v60  ;;  %v2627_v61 = vld [vmem:[%s3639_s2 + $0x48] sm:$0xff]  ;;  %v2632_v62 = vld [vmem:[%s3639_s2 + $0x58] sm:$0xff] }
  0x2c   :  { %193 = vmatprep.mubr.f32.mxu0 %v3642_v3  ;;  %306 = vmatprep.mubr.f32.mxu1 %v3642_v3  ;;  %3740 = vst [vmem:[#allocation14_spill] sm:$0xff] %v2627_v61  ;;  %3741 = vst [vmem:[#allocation15_spill] sm:$0xff] %v2632_v62  ;;  %v2641_v63 = vld [vmem:[%s3639_s2 + $0x40] sm:$0xff]  ;;  %v2646_v0 = vld [vmem:[%s3639_s2 + $0x50] sm:$0xff] }
  0x2d   :  { %452 = vmatpush1.msra.mxu0 %v2376_v18  ;;  %523 = vmatpush1.msra.mxu1 %v2381_v19  ;;  %3742 = vst [vmem:[#allocation16_spill] sm:$0xff] %v2641_v63  ;;  %3743 = vst [vmem:[#allocation17_spill] sm:$0xff] %v2646_v0  ;;  %v30_v1 = vld [vmem:[%s3638_s0 + $0x38] sm:$0xff]  ;;  %v2658_v11 = vld [vmem:[%s3639_s2 + $0x28] sm:$0xff] }
  0x2e   :  { %194 = vmatmul.mubr.f32.gmra.mxu0 %v25_v20  ;;  %307 = vmatmul.mubr.f32.gmra.mxu1 %v25_v20  ;;  %3744 = vst [vmem:[#allocation18_spill] sm:$0xff] %v2658_v11  ;;  %v2663_v20 = vld [vmem:[%s3639_s2 + $0x38] sm:$0xff] }
  0x2f   :  { %453 = vmatprep.subr.mxu0 %v2393_v21  ;;  %524 = vmatprep.subr.mxu1 %v2398_v22  ;;  %3745 = vst [vmem:[#allocation19_spill] sm:$0xff] %v2663_v20 }
  0x30   :  { %454 = vmatpush1.msra.mxu0 %v2405_v23  ;;  %525 = vmatpush1.msra.mxu1 %v2410_v24 }
  0x31   :  { %455 = vmatprep.subr.mxu0 %v2415_v25  ;;  %526 = vmatprep.subr.mxu1 %v2420_v26 }
  0x32   :  { %199 = vmatprep.mubr.f32.mxu0 %v3642_v3  ;;  %312 = vmatprep.mubr.f32.mxu1 %v3642_v3 }
  0x33   :  { %456 = vmatpush1.msra.mxu0 %v2429_v27  ;;  %527 = vmatpush1.msra.mxu1 %v2434_v28 }
  0x34   :  { %200 = vmatmul.mubr.f32.gmra.mxu0 %v26_v29  ;;  %313 = vmatmul.mubr.f32.gmra.mxu1 %v26_v29  ;;  %v2670_v29 = vld [vmem:[%s3639_s2 + $0x20] sm:$0xff] }
  0x35   :  { %457 = vmatprep.subr.mxu0 %v2446_v30  ;;  %528 = vmatprep.subr.mxu1 %v2451_v31  ;;  %3746 = vst [vmem:[#allocation20_spill] sm:$0xff] %v2670_v29 }
  0x36   :  { %458 = vmatpush1.msra.mxu0 %v2458_v32  ;;  %529 = vmatpush1.msra.mxu1 %v2463_v33 }
  0x37   :  { %459 = vmatprep.subr.mxu0 %v2468_v34  ;;  %530 = vmatprep.subr.mxu1 %v2473_v35 }
  0x38   :  { %205 = vmatprep.mubr.f32.mxu0 %v3642_v3  ;;  %318 = vmatprep.mubr.f32.mxu1 %v3642_v3 }
  0x39   :  { %460 = vmatpush1.msra.mxu0 %v2482_v36  ;;  %531 = vmatpush1.msra.mxu1 %v2487_v37 }
  0x3a   :  { %206 = vmatmul.mubr.f32.gmra.mxu0 %v27_v38  ;;  %319 = vmatmul.mubr.f32.gmra.mxu1 %v27_v38  ;;  %v2675_v38 = vld [vmem:[%s3639_s2 + $0x30] sm:$0xff] }
  0x3b   :  { %461 = vmatprep.subr.mxu0 %v2499_v39  ;;  %532 = vmatprep.subr.mxu1 %v2504_v40  ;;  %3747 = vst [vmem:[#allocation21_spill] sm:$0xff] %v2675_v38 }
  0x3c   :  { %462 = vmatpush1.msra.mxu0 %v2511_v41  ;;  %533 = vmatpush1.msra.mxu1 %v2516_v42 }
  0x3d   :  { %463 = vmatprep.subr.mxu0 %v2521_v43  ;;  %534 = vmatprep.subr.mxu1 %v2526_v44 }
  0x3e   :  { %211 = vmatprep.mubr.f32.mxu0 %v3642_v3  ;;  %324 = vmatprep.mubr.f32.mxu1 %v3642_v3 }
  0x3f   :  { %464 = vmatpush1.msra.mxu0 %v2535_v45  ;;  %535 = vmatpush1.msra.mxu1 %v2540_v46 }
  0x40   :  { %212 = vmatmul.mubr.f32.gmra.mxu0 %v28_v47  ;;  %325 = vmatmul.mubr.f32.gmra.mxu1 %v28_v47  ;;  %v2680_v47 = vld [vmem:[%s3639_s2 + $0x8] sm:$0xff] }
  0x41   :  { %465 = vmatprep.subr.mxu0 %v2552_v48  ;;  %536 = vmatprep.subr.mxu1 %v2557_v49  ;;  %3748 = vst [vmem:[#allocation22_spill] sm:$0xff] %v2680_v47 }
  0x42   :  { %466 = vmatpush1.msra.mxu0 %v2564_v50  ;;  %537 = vmatpush1.msra.mxu1 %v2569_v51 }
  0x43   :  { %467 = vmatprep.subr.mxu0 %v2574_v52  ;;  %538 = vmatprep.subr.mxu1 %v2579_v53 }
  0x44   :  { %217 = vmatprep.mubr.f32.mxu0 %v3642_v3  ;;  %330 = vmatprep.mubr.f32.mxu1 %v3642_v3 }
  0x45   :  { %468 = vmatpush1.msra.mxu0 %v2588_v54  ;;  %539 = vmatpush1.msra.mxu1 %v2593_v55 }
  0x46   :  { %218 = vmatmul.mubr.f32.gmra.mxu0 %v29_v56  ;;  %331 = vmatmul.mubr.f32.gmra.mxu1 %v29_v56  ;;  %v2685_v56 = vld [vmem:[%s3639_s2 + $0x18] sm:$0xff] }
  0x47   :  { %469 = vmatprep.subr.mxu0 %v2605_v57  ;;  %540 = vmatprep.subr.mxu1 %v2610_v58  ;;  %3749 = vst [vmem:[#allocation23_spill] sm:$0xff] %v2685_v56 }
  0x48   :  { %470 = vmatpush1.msra.mxu0 %v2617_v59  ;;  %541 = vmatpush1.msra.mxu1 %v2622_v60 }
  0x49   :  { %471 = vmatprep.subr.mxu0 %v2627_v61  ;;  %542 = vmatprep.subr.mxu1 %v2632_v62 }
  0x4a   :  { %223 = vmatprep.mubr.f32.mxu0 %v3642_v3  ;;  %336 = vmatprep.mubr.f32.mxu1 %v3642_v3  ;;  %v2692_v3 = vld [vmem:[%s3639_s2] sm:$0xff] }
  0x4b   :  { %472 = vmatpush1.msra.mxu0 %v2641_v63  ;;  %543 = vmatpush1.msra.mxu1 %v2646_v0  ;;  %3750 = vst [vmem:[#allocation24_spill] sm:$0xff] %v2692_v3 }
  0x4c   :  { %224 = vmatmul.mubr.f32.gmra.mxu0 %v30_v1  ;;  %337 = vmatmul.mubr.f32.gmra.mxu1 %v30_v1  ;;  %v2699_v1 = vld [vmem:[%s3639_s2 + $0x10] sm:$0xff] }
  0x4d   :  { %473 = vmatprep.subr.mxu0 %v2658_v11  ;;  %544 = vmatprep.subr.mxu1 %v2663_v20  ;;  %3751 = vst [vmem:[#allocation25_spill] sm:$0xff] %v2699_v1  ;;  %v3752_v20 = vmov 0.0  }
  0x4e   :  { %474 = vmatpush1.msra.mxu0 %v2670_v29  ;;  %545 = vmatpush1.msra.mxu1 %v2675_v38 }
  0x4f   :  { %475 = vmatprep.subr.mxu0 %v2680_v47  ;;  %546 = vmatprep.subr.mxu1 %v2685_v56 }
  0x50   :  { %476 = vmatpush1.msra.mxu0 %v2692_v3  ;;  %509 = vmatprep.mubr.f32.mxu0 %v3752_v20 }
  0x51   :  { %547 = vmatpush1.msra.mxu1 %v2699_v1  ;;  %580 = vmatprep.mubr.f32.mxu1 %v3752_v20 }
  0x52   :  { %510 = vmatmul.mubr.f32.vlgmr.msra.gmra.mxu0 %v3752_v20  ;;  %581 = vmatmul.mubr.f32.vlgmr.msra.gmra.mxu1 %v3752_v20 }
  0x53   :  { %620 = vmatprep.subr.mxu0 %v2289_v2  ;;  %691 = vmatprep.subr.mxu1 %v2294_v4 }
  0x54   :  { %621 = vmatpush1.msra.mxu0 %v2299_v5  ;;  %692 = vmatpush1.msra.mxu1 %v2304_v6 }
  0x55   :  { %622 = vmatprep.subr.mxu0 %v2309_v7  ;;  %693 = vmatprep.subr.mxu1 %v2314_v8 }
  0x56   :  { %623 = vmatpush1.msra.mxu0 %v2323_v9  ;;  %694 = vmatpush1.msra.mxu1 %v2328_v10 }
  0x57   :  { %624 = vmatprep.subr.mxu0 %v2340_v12  ;;  %695 = vmatprep.subr.mxu1 %v2345_v13 }
  0x58   :  { %625 = vmatpush1.msra.mxu0 %v2352_v14  ;;  %696 = vmatpush1.msra.mxu1 %v2357_v15 }
  0x59   :  { %626 = vmatprep.subr.mxu0 %v2362_v16  ;;  %697 = vmatprep.subr.mxu1 %v2367_v17 }
  0x5a   :  { %627 = vmatpush1.msra.mxu0 %v2376_v18  ;;  %698 = vmatpush1.msra.mxu1 %v2381_v19 }
  0x5b   :  { %628 = vmatprep.subr.mxu0 %v2393_v21  ;;  %699 = vmatprep.subr.mxu1 %v2398_v22 }
  0x5c   :  { %629 = vmatpush1.msra.mxu0 %v2405_v23  ;;  %700 = vmatpush1.msra.mxu1 %v2410_v24 }
  0x5d   :  { %630 = vmatprep.subr.mxu0 %v2415_v25  ;;  %701 = vmatprep.subr.mxu1 %v2420_v26 }
  0x5e   :  { %631 = vmatpush1.msra.mxu0 %v2429_v27  ;;  %702 = vmatpush1.msra.mxu1 %v2434_v28 }
  0x5f   :  { %632 = vmatprep.subr.mxu0 %v2446_v30  ;;  %703 = vmatprep.subr.mxu1 %v2451_v31 }
  0x60   :  { %633 = vmatpush1.msra.mxu0 %v2458_v32  ;;  %704 = vmatpush1.msra.mxu1 %v2463_v33 }
  0x61   :  { %634 = vmatprep.subr.mxu0 %v2468_v34  ;;  %705 = vmatprep.subr.mxu1 %v2473_v35 }
  0x62   :  { %635 = vmatpush1.msra.mxu0 %v2482_v36  ;;  %706 = vmatpush1.msra.mxu1 %v2487_v37 }
  0x63   :  { %636 = vmatprep.subr.mxu0 %v2499_v39  ;;  %707 = vmatprep.subr.mxu1 %v2504_v40 }
  0x64   :  { %637 = vmatpush1.msra.mxu0 %v2511_v41  ;;  %708 = vmatpush1.msra.mxu1 %v2516_v42 }
  0x65   :  { %638 = vmatprep.subr.mxu0 %v2521_v43  ;;  %709 = vmatprep.subr.mxu1 %v2526_v44 }
  0x66   :  { %639 = vmatpush1.msra.mxu0 %v2535_v45  ;;  %710 = vmatpush1.msra.mxu1 %v2540_v46 }
  0x67   :  { %640 = vmatprep.subr.mxu0 %v2552_v48  ;;  %711 = vmatprep.subr.mxu1 %v2557_v49 }
  0x68   :  { %641 = vmatpush1.msra.mxu0 %v2564_v50  ;;  %712 = vmatpush1.msra.mxu1 %v2569_v51 }
  0x69   :  { %642 = vmatprep.subr.mxu0 %v2574_v52  ;;  %713 = vmatprep.subr.mxu1 %v2579_v53 }
  0x6a   :  { %643 = vmatpush1.msra.mxu0 %v2588_v54  ;;  %714 = vmatpush1.msra.mxu1 %v2593_v55  ;;  %v3753_v54 = vld [vmem:[#allocation19_spill] sm:$0xff] }
  0x6b   :  { %644 = vmatprep.subr.mxu0 %v2605_v57  ;;  %715 = vmatprep.subr.mxu1 %v2610_v58 }
  0x6c   :  { %645 = vmatpush1.msra.mxu0 %v2617_v59  ;;  %716 = vmatpush1.msra.mxu1 %v2622_v60 }
  0x6d   :  { %646 = vmatprep.subr.mxu0 %v2627_v61  ;;  %717 = vmatprep.subr.mxu1 %v2632_v62 }
  0x6e   :  { %647 = vmatpush1.msra.mxu0 %v2641_v63  ;;  %718 = vmatpush1.msra.mxu1 %v2646_v0 }
  0x6f   :  { %648 = vmatprep.subr.mxu0 %v2658_v11  ;;  %719 = vmatprep.subr.mxu1 %v3753_v54  ;;  %v97_v54 = vlaneseq }
  0x70   :  { %649 = vmatpush1.msra.mxu0 %v2670_v29  ;;  %720 = vmatpush1.msra.mxu1 %v2675_v38 }
  0x71   :  { %650 = vmatprep.subr.mxu0 %v2680_v47  ;;  %721 = vmatprep.subr.mxu1 %v2685_v56  ;;  %v98_v29 = vshrl.u32 %v97_v54, 7 }
  0x72   :  { %651 = vmatpush1.msra.mxu0 %v2692_v3  ;;  %684 = vmatprep.mubr.f32.mxu0 %v3752_v20  ;;  %v95_v3 = vld [vmem:[%s3640_s3] sm:$0xf] }
  0x73   :  { %722 = vmatpush1.msra.mxu1 %v2699_v1  ;;  %755 = vmatprep.mubr.f32.mxu1 %v3752_v20  ;;  %v99_v47 = vsub.s32 0, %v98_v29  ;;  %v107_v56 = vsub.s32 2, %v98_v29  ;;  %v103_v20 = vsub.s32 1, %v98_v29 }
  0x74   :  { %795 = vmatprep.subr.mxu0 %v2289_v2  ;;  %866 = vmatprep.subr.mxu1 %v2294_v4  ;;  %v111_v2 = vsub.s32 3, %v98_v29 }
  0x75   :  { %v100_v63 = vrot.slane %v95_v3, %v99_v47  ;;  %v2788_v4 = vrot.slane %v95_v3, %v107_v56  ;;  %v104_v61 = vrot.slane %v95_v3, %v103_v20 }
  0x76   :  { %v2790_v60 = vrot.slane %v95_v3, %v111_v2 }
  0xe2   :  { %v2777_v11 = vpop.f32.mrf.mxu0  ;;  %v2779_v38 = vpop.f32.mrf.mxu1 }
  0xe4   :  { %v2784_v0 = vpop.f32.mrf.mxu0  ;;  %v2786_v1 = vpop.f32.mrf.mxu1 }
  0xe8   :  { %v189_v54 = vpop.f32.mrf.mxu0  ;;  %v302_v62 = vpop.f32.mrf.mxu1 }
  0xe9   :  { %v2792_v59 = vadd.f32 %v189_v54, %v100_v63  ;;  %v2795_v58 = vadd.f32 %v302_v62, %v2788_v4 }
  0xea   :  { %v191_v57 = vpop.f32.mrf.mxu0  ;;  %v304_v55 = vpop.f32.mrf.mxu1 }
  0xeb   :  { %3754 = vst [vmem:[#allocation26_spill] sm:$0xff] %v2792_v59  ;;  %3755 = vst [vmem:[#allocation27_spill] sm:$0xff] %v2795_v58  ;;  %v2797_v53 = vadd.f32 %v191_v57, %v104_v61  ;;  %v2800_v52 = vadd.f32 %v304_v55, %v2790_v60 }
  0xed   :  { %3756 = vst [vmem:[#allocation28_spill] sm:$0xff] %v2797_v53  ;;  %3757 = vst [vmem:[#allocation29_spill] sm:$0xff] %v2800_v52 }
  0xee   :  { %v195_v29 = vpop.f32.mrf.mxu0  ;;  %v308_v47 = vpop.f32.mrf.mxu1 }
  0xef   :  { %v2802_v56 = vadd.f32 %v195_v29, %v100_v63  ;;  %v2805_v20 = vadd.f32 %v308_v47, %v2788_v4 }
  0xf0   :  { %v197_v3 = vpop.f32.mrf.mxu0  ;;  %v310_v2 = vpop.f32.mrf.mxu1 }
  0xf1   :  { %3758 = vst [vmem:[#allocation30_spill] sm:$0xff] %v2802_v56  ;;  %3759 = vst [vmem:[#allocation31_spill] sm:$0xff] %v2805_v20  ;;  %v2807_v54 = vadd.f32 %v197_v3, %v104_v61  ;;  %v2810_v62 = vadd.f32 %v310_v2, %v2790_v60 }
  0xf3   :  { %3760 = vst [vmem:[#allocation32_spill] sm:$0xff] %v2807_v54  ;;  %3761 = vst [vmem:[#allocation33_spill] sm:$0xff] %v2810_v62 }
  0xf4   :  { %v201_v58 = vpop.f32.mrf.mxu0  ;;  %v314_v57 = vpop.f32.mrf.mxu1 }
  0xf5   :  { %v2812_v53 = vadd.f32 %v201_v58, %v100_v63  ;;  %v2815_v55 = vadd.f32 %v314_v57, %v2788_v4 }
  0xf6   :  { %v203_v52 = vpop.f32.mrf.mxu0  ;;  %v316_v29 = vpop.f32.mrf.mxu1 }
  0xf7   :  { %3762 = vst [vmem:[#allocation34_spill] sm:$0xff] %v2812_v53  ;;  %3763 = vst [vmem:[#allocation35_spill] sm:$0xff] %v2815_v55  ;;  %v2817_v56 = vadd.f32 %v203_v52, %v104_v61  ;;  %v2820_v47 = vadd.f32 %v316_v29, %v2790_v60 }
  0xf9   :  { %3764 = vst [vmem:[#allocation36_spill] sm:$0xff] %v2817_v56  ;;  %3765 = vst [vmem:[#allocation37_spill] sm:$0xff] %v2820_v47 }
  0xfa   :  { %v207_v20 = vpop.f32.mrf.mxu0  ;;  %v320_v3 = vpop.f32.mrf.mxu1 }
  0xfb   :  { %v2822_v54 = vadd.f32 %v207_v20, %v100_v63  ;;  %v2825_v2 = vadd.f32 %v320_v3, %v2788_v4 }
  0xfc   :  { %v209_v62 = vpop.f32.mrf.mxu0  ;;  %v322_v58 = vpop.f32.mrf.mxu1 }
  0xfd   :  { %3766 = vst [vmem:[#allocation38_spill] sm:$0xff] %v2822_v54  ;;  %3767 = vst [vmem:[#allocation39_spill] sm:$0xff] %v2825_v2  ;;  %v2827_v53 = vadd.f32 %v209_v62, %v104_v61  ;;  %v2830_v57 = vadd.f32 %v322_v58, %v2790_v60 }
  0xff   :  { %3768 = vst [vmem:[#allocation40_spill] sm:$0xff] %v2827_v53  ;;  %3769 = vst [vmem:[#allocation41_spill] sm:$0xff] %v2830_v57 }
 0x100   :  { %v213_v55 = vpop.f32.mrf.mxu0  ;;  %v326_v52 = vpop.f32.mrf.mxu1 }
 0x101   :  { %v2832_v56 = vadd.f32 %v213_v55, %v100_v63  ;;  %v2835_v29 = vadd.f32 %v326_v52, %v2788_v4 }
 0x102   :  { %v215_v47 = vpop.f32.mrf.mxu0  ;;  %v328_v20 = vpop.f32.mrf.mxu1 }
 0x103   :  { %3770 = vst [vmem:[#allocation42_spill] sm:$0xff] %v2832_v56  ;;  %3771 = vst [vmem:[#allocation43_spill] sm:$0xff] %v2835_v29  ;;  %v2837_v54 = vadd.f32 %v215_v47, %v104_v61  ;;  %v2840_v3 = vadd.f32 %v328_v20, %v2790_v60 }
 0x105   :  { %3772 = vst [vmem:[#allocation44_spill] sm:$0xff] %v2837_v54  ;;  %3773 = vst [vmem:[#allocation45_spill] sm:$0xff] %v2840_v3 }
 0x106   :  { %v219_v2 = vpop.f32.mrf.mxu0  ;;  %v332_v62 = vpop.f32.mrf.mxu1 }
 0x107   :  { %v2842_v53 = vadd.f32 %v219_v2, %v100_v63  ;;  %v2845_v58 = vadd.f32 %v332_v62, %v2788_v4 }
 0x108   :  { %v221_v57 = vpop.f32.mrf.mxu0  ;;  %v334_v55 = vpop.f32.mrf.mxu1 }
 0x109   :  { %3774 = vst [vmem:[#allocation46_spill] sm:$0xff] %v2842_v53  ;;  %3775 = vst [vmem:[#allocation47_spill] sm:$0xff] %v2845_v58  ;;  %v2847_v56 = vadd.f32 %v221_v57, %v104_v61  ;;  %v2850_v52 = vadd.f32 %v334_v55, %v2790_v60  ;;  %v184_v57 = vadd.f32 %v2777_v11, %v100_v63 }
 0x10a   :  { %v186_v55 = vadd.f32 %v2784_v0, %v104_v61 }
 0x10b   :  { %3776 = vst [vmem:[#allocation48_spill] sm:$0xff] %v2847_v56  ;;  %3777 = vst [vmem:[#allocation49_spill] sm:$0xff] %v2850_v52 }
 0x10c   :  { %v225_v29 = vpop.f32.mrf.mxu0  ;;  %v338_v47 = vpop.f32.mrf.mxu1 }
 0x10d   :  { %v2852_v54 = vadd.f32 %v225_v29, %v100_v63  ;;  %v2855_v20 = vadd.f32 %v338_v47, %v2788_v4 }
 0x10e   :  { %v227_v3 = vpop.f32.mrf.mxu0  ;;  %v340_v2 = vpop.f32.mrf.mxu1 }
 0x10f   :  { %3778 = vst [vmem:[#allocation50_spill] sm:$0xff] %v2852_v54  ;;  %3779 = vst [vmem:[#allocation51_spill] sm:$0xff] %v2855_v20  ;;  %v2857_v53 = vadd.f32 %v227_v3, %v104_v61  ;;  %v2860_v62 = vadd.f32 %v340_v2, %v2790_v60  ;;  %v299_v3 = vadd.f32 %v2786_v1, %v2790_v60 }
 0x110   :  { %v297_v2 = vadd.f32 %v2779_v38, %v2788_v4 }
 0x111   :  { %3780 = vst [vmem:[#allocation52_spill] sm:$0xff] %v2857_v53  ;;  %3781 = vst [vmem:[#allocation53_spill] sm:$0xff] %v2860_v62 }
 0x112   :  { %v511_v58 = vpop.f32.mrf.mxu0  ;;  %v582_v54 = vpop.f32.mrf.mxu1 }
 0x113   :  { %v587_v52 = vadd.f32 %v511_v58, %v184_v57  ;;  %v589_v62 = vadd.f32 %v582_v54, %v297_v2  ;;  %v3782_v54 = vld [vmem:[#allocation6_spill] sm:$0xff]  ;;  %v3787_v2 = vld [vmem:[#allocation11_spill] sm:$0xff] }
 0x114   :  { %v513_v56 = vpop.f32.mrf.mxu0  ;;  %v584_v20 = vpop.f32.mrf.mxu1 }
 0x115   :  { %v1846_v59 = vmul.f32 -1.442695, %v587_v52  ;;  %v588_v29 = vadd.f32 %v513_v56, %v186_v55  ;;  %v590_v53 = vadd.f32 %v584_v20, %v299_v3  ;;  %v3786_v3 = vld [vmem:[#allocation10_spill] sm:$0xff] }
 0x117   :  { %1871 = vpow2.f32 %v1846_v59  ;;  %v1847_v47 = vmul.f32 -1.442695, %v588_v29  ;;  %v1848_v63 = vmul.f32 -1.442695, %v590_v53  ;;  %v3784_v29 = vld [vmem:[#allocation8_spill] sm:$0xff] }
 0x119   :  { %1873 = vpow2.f32 %v1847_v47  ;;  %v3785_v47 = vld [vmem:[#allocation9_spill] sm:$0xff] }
 0x11a   :  { %1875 = vpow2.f32 %v1848_v63  ;;  %v3788_v63 = vld [vmem:[#allocation12_spill] sm:$0xff] }
 0x124   :  { %v1872_v11 = vpop.eup %1871 }
 0x125   :  { %v594_v61 = vadd.f32 1.0, %v1872_v11  ;;  %v3789_v11 = vld [vmem:[#allocation13_spill] sm:$0xff] }
 0x126   :  { %v1874_v0 = vpop.eup %1873 }
 0x127   :  { %1877 = vrcp.f32 %v594_v61  ;;  %v600_v56 = vadd.f32 1.0, %v1874_v0  ;;  %v1876_v59 = vpop.eup %1875  ;;  %v3790_v61 = vld [vmem:[#allocation14_spill] sm:$0xff]  ;;  %v3791_v0 = vld [vmem:[#allocation15_spill] sm:$0xff] }
 0x128   :  { %1879 = vtanh.f32 %v589_v62  ;;  %v607_v55 = vadd.f32 1.0, %v1876_v59  ;;  %v3783_v62 = vld [vmem:[#allocation7_spill] sm:$0xff]  ;;  %v3793_v59 = vld [vmem:[#allocation17_spill] sm:$0xff] }
 0x129   :  { %1881 = vrcp.f32 %v600_v56  ;;  %v3792_v56 = vld [vmem:[#allocation16_spill] sm:$0xff] }
 0x12a   :  { %1883 = vrcp.f32 %v607_v55  ;;  %v3797_v55 = vld [vmem:[#allocation21_spill] sm:$0xff] }
 0x134   :  { %v1878_v58 = vpop.eup %1877 }
 0x135   :  { %v1880_v52 = vpop.eup %1879 }
 0x136   :  { %v1882_v57 = vpop.eup %1881  ;;  %v611_v1 = vmul.f32 %v1880_v52, %v1878_v58  ;;  %v3794_v58 = vld [vmem:[#allocation18_spill] sm:$0xff]  ;;  %v3795_v52 = vld [vmem:[#allocation19_spill] sm:$0xff] }
 0x137   :  { %v610_v60 = vmul.f32 0.0, %v1882_v57  ;;  %v1884_v4 = vpop.eup %1883  ;;  %v3796_v57 = vld [vmem:[#allocation20_spill] sm:$0xff] }
 0x139   :  { %v2868_v20 = vadd.f32 %v611_v1, %v610_v60  ;;  %v3798_v60 = vld [vmem:[#allocation22_spill] sm:$0xff]  ;;  %v3799_v1 = vld [vmem:[#allocation23_spill] sm:$0xff] }
 0x13b   :  { %1885 = vtanh.f32 %v2868_v20 }
 0x148   :  { %v1886_v53 = vpop.eup %1885 }
 0x149   :  { %v614_v38 = vmul.f32 %v1886_v53, %v1884_v4  ;;  %v3800_v4 = vld [vmem:[#allocation24_spill] sm:$0xff]  ;;  %v3801_v53 = vmov 0.0  }
 0x14b   :  { %685 = vmatmul.mubr.f32.vlgmr.msra.gmra.mxu0 %v614_v38  ;;  %756 = vmatmul.mubr.f32.vlgmr.msra.gmra.mxu1 %v614_v38  ;;  %v3802_v38 = vld [vmem:[#allocation25_spill] sm:$0xff] }
 0x14c   :  { %796 = vmatpush1.msra.mxu0 %v2299_v5  ;;  %867 = vmatpush1.msra.mxu1 %v2304_v6 }
 0x14d   :  { %797 = vmatprep.subr.mxu0 %v2309_v7  ;;  %868 = vmatprep.subr.mxu1 %v2314_v8 }
 0x14e   :  { %798 = vmatpush1.msra.mxu0 %v2323_v9  ;;  %869 = vmatpush1.msra.mxu1 %v2328_v10 }
 0x14f   :  { %799 = vmatprep.subr.mxu0 %v2340_v12  ;;  %870 = vmatprep.subr.mxu1 %v2345_v13 }
 0x150   :  { %800 = vmatpush1.msra.mxu0 %v2352_v14  ;;  %871 = vmatpush1.msra.mxu1 %v2357_v15 }
 0x151   :  { %801 = vmatprep.subr.mxu0 %v2362_v16  ;;  %872 = vmatprep.subr.mxu1 %v2367_v17 }
 0x152   :  { %802 = vmatpush1.msra.mxu0 %v2376_v18  ;;  %873 = vmatpush1.msra.mxu1 %v2381_v19 }
 0x153   :  { %803 = vmatprep.subr.mxu0 %v2393_v21  ;;  %874 = vmatprep.subr.mxu1 %v2398_v22 }
 0x154   :  { %804 = vmatpush1.msra.mxu0 %v2405_v23  ;;  %875 = vmatpush1.msra.mxu1 %v2410_v24 }
 0x155   :  { %805 = vmatprep.subr.mxu0 %v2415_v25  ;;  %876 = vmatprep.subr.mxu1 %v2420_v26 }
 0x156   :  { %806 = vmatpush1.msra.mxu0 %v2429_v27  ;;  %877 = vmatpush1.msra.mxu1 %v2434_v28 }
 0x157   :  { %807 = vmatprep.subr.mxu0 %v2446_v30  ;;  %878 = vmatprep.subr.mxu1 %v2451_v31 }
 0x158   :  { %808 = vmatpush1.msra.mxu0 %v2458_v32  ;;  %879 = vmatpush1.msra.mxu1 %v2463_v33 }
 0x159   :  { %809 = vmatprep.subr.mxu0 %v2468_v34  ;;  %880 = vmatprep.subr.mxu1 %v2473_v35 }
 0x15a   :  { %810 = vmatpush1.msra.mxu0 %v2482_v36  ;;  %881 = vmatpush1.msra.mxu1 %v2487_v37 }
 0x15b   :  { %811 = vmatprep.subr.mxu0 %v2499_v39  ;;  %882 = vmatprep.subr.mxu1 %v2504_v40 }
 0x15c   :  { %812 = vmatpush1.msra.mxu0 %v2511_v41  ;;  %883 = vmatpush1.msra.mxu1 %v2516_v42 }
 0x15d   :  { %813 = vmatprep.subr.mxu0 %v2521_v43  ;;  %884 = vmatprep.subr.mxu1 %v2526_v44 }
 0x15e   :  { %814 = vmatpush1.msra.mxu0 %v2535_v45  ;;  %885 = vmatpush1.msra.mxu1 %v2540_v46 }
 0x15f   :  { %815 = vmatprep.subr.mxu0 %v2552_v48  ;;  %886 = vmatprep.subr.mxu1 %v2557_v49 }
 0x160   :  { %816 = vmatpush1.msra.mxu0 %v2564_v50  ;;  %887 = vmatpush1.msra.mxu1 %v2569_v51 }
 0x161   :  { %817 = vmatprep.subr.mxu0 %v3782_v54  ;;  %888 = vmatprep.subr.mxu1 %v3783_v62 }
 0x162   :  { %818 = vmatpush1.msra.mxu0 %v3784_v29  ;;  %889 = vmatpush1.msra.mxu1 %v3785_v47 }
 0x163   :  { %819 = vmatprep.subr.mxu0 %v3786_v3  ;;  %890 = vmatprep.subr.mxu1 %v3787_v2  ;;  %v3808_v2 = vld [vmem:[#allocation27_spill] sm:$0xff] }
 0x164   :  { %820 = vmatpush1.msra.mxu0 %v3788_v63  ;;  %891 = vmatpush1.msra.mxu1 %v3789_v11  ;;  %v3807_v63 = vld [vmem:[#allocation29_spill] sm:$0xff] }
 0x165   :  { %821 = vmatprep.subr.mxu0 %v3790_v61  ;;  %892 = vmatprep.subr.mxu1 %v3791_v0 }
 0x166   :  { %822 = vmatpush1.msra.mxu0 %v3792_v56  ;;  %893 = vmatpush1.msra.mxu1 %v3793_v59  ;;  %v3803_v59 = vld [vmem:[#allocation4_spill] sm:$0xff] }
 0x167   :  { %823 = vmatprep.subr.mxu0 %v3794_v58  ;;  %894 = vmatprep.subr.mxu1 %v3795_v52  ;;  %v3804_v58 = vld [vmem:[#allocation5_spill] sm:$0xff] }
 0x168   :  { %824 = vmatpush1.msra.mxu0 %v3796_v57  ;;  %895 = vmatpush1.msra.mxu1 %v3797_v55  ;;  %v3805_v57 = vld [vmem:[#allocation26_spill] sm:$0xff] }
 0x169   :  { %825 = vmatprep.subr.mxu0 %v3798_v60  ;;  %896 = vmatprep.subr.mxu1 %v3799_v1  ;;  %v3806_v60 = vld [vmem:[#allocation28_spill] sm:$0xff] }
 0x16a   :  { %826 = vmatpush1.msra.mxu0 %v3800_v4  ;;  %859 = vmatprep.mubr.f32.mxu0 %v3801_v53 }
 0x16b   :  { %897 = vmatpush1.msra.mxu1 %v3802_v38  ;;  %930 = vmatprep.mubr.f32.mxu1 %v3801_v53 }
 0x16c   :  { %970 = vmatprep.subr.mxu0 %v3803_v59  ;;  %1041 = vmatprep.subr.mxu1 %v3804_v58 }
 0x20b   :  { %v686_v52 = vpop.f32.mrf.mxu0  ;;  %v757_v1 = vpop.f32.mrf.mxu1 }
 0x20c   :  { %v762_v56 = vadd.f32 %v686_v52, %v3805_v57  ;;  %v764_v53 = vadd.f32 %v757_v1, %v3808_v2 }
 0x20d   :  { %v688_v55 = vpop.f32.mrf.mxu0  ;;  %v759_v11 = vpop.f32.mrf.mxu1 }
 0x20e   :  { %v1849_v0 = vmul.f32 -1.442695, %v762_v56  ;;  %v763_v61 = vadd.f32 %v688_v55, %v3806_v60  ;;  %v765_v38 = vadd.f32 %v759_v11, %v3807_v63 }
 0x210   :  { %1887 = vpow2.f32 %v1849_v0  ;;  %v1850_v4 = vmul.f32 -1.442695, %v763_v61  ;;  %v1851_v3 = vmul.f32 -1.442695, %v765_v38  ;;  %v3831_v38 = vld [vmem:[#allocation33_spill] sm:$0xff] }
 0x212   :  { %1889 = vpow2.f32 %v1850_v4 }
 0x213   :  { %1891 = vtanh.f32 %v764_v53 }
 0x214   :  { %1893 = vpow2.f32 %v1851_v3 }
 0x21d   :  { %v1888_v59 = vpop.eup %1887 }
 0x21e   :  { %v769_v47 = vadd.f32 1.0, %v1888_v59 }
 0x21f   :  { %v1890_v58 = vpop.eup %1889 }
 0x220   :  { %1895 = vrcp.f32 %v769_v47  ;;  %v775_v52 = vadd.f32 1.0, %v1890_v58  ;;  %v1892_v56 = vpop.eup %1891  ;;  %v3832_v58 = vld [vmem:[#allocation31_spill] sm:$0xff] }
 0x221   :  { %v1894_v57 = vpop.eup %1893 }
 0x222   :  { %1897 = vrcp.f32 %v775_v52  ;;  %v782_v60 = vadd.f32 1.0, %v1894_v57 }
 0x224   :  { %1899 = vrcp.f32 %v782_v60 }
 0x22d   :  { %v1896_v0 = vpop.eup %1895 }
 0x22e   :  { %v786_v55 = vmul.f32 %v1896_v0, %v1892_v56 }
 0x22f   :  { %v1898_v61 = vpop.eup %1897 }
 0x230   :  { %v785_v4 = vmul.f32 %v1898_v61, %v2868_v20 }
 0x231   :  { %v1900_v2 = vpop.eup %1899 }
 0x232   :  { %v2942_v63 = vadd.f32 %v786_v55, %v785_v4 }
 0x234   :  { %1901 = vtanh.f32 %v2942_v63 }
 0x241   :  { %v1902_v11 = vpop.eup %1901 }
 0x242   :  { %v789_v1 = vmul.f32 %v1902_v11, %v1900_v2 }
 0x244   :  { %860 = vmatmul.mubr.f32.vlgmr.msra.gmra.mxu0 %v789_v1  ;;  %931 = vmatmul.mubr.f32.vlgmr.msra.gmra.mxu1 %v789_v1 }
 0x245   :  { %971 = vmatpush1.msra.mxu0 %v2299_v5  ;;  %1042 = vmatpush1.msra.mxu1 %v2304_v6  ;;  %v3809_v5 = vld [vmem:[#allocation9_spill] sm:$0xff]  ;;  %v3810_v6 = vld [vmem:[#allocation10_spill] sm:$0xff] }
 0x246   :  { %972 = vmatprep.subr.mxu0 %v2309_v7  ;;  %1043 = vmatprep.subr.mxu1 %v2314_v8  ;;  %v3811_v7 = vld [vmem:[#allocation11_spill] sm:$0xff]  ;;  %v3812_v8 = vld [vmem:[#allocation12_spill] sm:$0xff] }
 0x247   :  { %973 = vmatpush1.msra.mxu0 %v2323_v9  ;;  %1044 = vmatpush1.msra.mxu1 %v2328_v10  ;;  %v3813_v9 = vld [vmem:[#allocation13_spill] sm:$0xff]  ;;  %v3814_v10 = vld [vmem:[#allocation14_spill] sm:$0xff] }
 0x248   :  { %974 = vmatprep.subr.mxu0 %v2340_v12  ;;  %1045 = vmatprep.subr.mxu1 %v2345_v13  ;;  %v3815_v12 = vld [vmem:[#allocation15_spill] sm:$0xff]  ;;  %v3816_v13 = vld [vmem:[#allocation16_spill] sm:$0xff] }
 0x249   :  { %975 = vmatpush1.msra.mxu0 %v2352_v14  ;;  %1046 = vmatpush1.msra.mxu1 %v2357_v15  ;;  %v3817_v14 = vld [vmem:[#allocation17_spill] sm:$0xff]  ;;  %v3818_v15 = vld [vmem:[#allocation18_spill] sm:$0xff] }
 0x24a   :  { %976 = vmatprep.subr.mxu0 %v2362_v16  ;;  %1047 = vmatprep.subr.mxu1 %v2367_v17  ;;  %v3819_v16 = vld [vmem:[#allocation19_spill] sm:$0xff]  ;;  %v3820_v17 = vld [vmem:[#allocation20_spill] sm:$0xff] }
 0x24b   :  { %977 = vmatpush1.msra.mxu0 %v2376_v18  ;;  %1048 = vmatpush1.msra.mxu1 %v2381_v19  ;;  %v3821_v18 = vld [vmem:[#allocation21_spill] sm:$0xff]  ;;  %v3822_v19 = vld [vmem:[#allocation22_spill] sm:$0xff] }
 0x24c   :  { %978 = vmatprep.subr.mxu0 %v2393_v21  ;;  %1049 = vmatprep.subr.mxu1 %v2398_v22  ;;  %v3823_v21 = vld [vmem:[#allocation23_spill] sm:$0xff]  ;;  %v3824_v22 = vld [vmem:[#allocation24_spill] sm:$0xff] }
 0x24d   :  { %979 = vmatpush1.msra.mxu0 %v2405_v23  ;;  %1050 = vmatpush1.msra.mxu1 %v2410_v24  ;;  %v3825_v23 = vmov 0.0   ;;  %v3826_v24 = vld [vmem:[#allocation25_spill] sm:$0xff] }
 0x24e   :  { %980 = vmatprep.subr.mxu0 %v2415_v25  ;;  %1051 = vmatprep.subr.mxu1 %v2420_v26  ;;  %v3012_v25 = vld [vmem:[%s3639_s2 + $0x1e8] sm:$0xff]  ;;  %v3018_v26 = vld [vmem:[%s3639_s2 + $0x1f8] sm:$0xff] }
 0x24f   :  { %981 = vmatpush1.msra.mxu0 %v2429_v27  ;;  %1052 = vmatpush1.msra.mxu1 %v2434_v28  ;;  %3827 = vst [vmem:[#allocation6_spill] sm:$0xff] %v3012_v25  ;;  %3828 = vst [vmem:[#allocation7_spill] sm:$0xff] %v3018_v26  ;;  %v3829_v28 = vld [vmem:[#allocation30_spill] sm:$0xff] }
 0x250   :  { %982 = vmatprep.subr.mxu0 %v2446_v30  ;;  %1053 = vmatprep.subr.mxu1 %v2451_v31 }
 0x251   :  { %983 = vmatpush1.msra.mxu0 %v2458_v32  ;;  %1054 = vmatpush1.msra.mxu1 %v2463_v33  ;;  %v3830_v33 = vld [vmem:[#allocation32_spill] sm:$0xff] }
 0x252   :  { %984 = vmatprep.subr.mxu0 %v2468_v34  ;;  %1055 = vmatprep.subr.mxu1 %v2473_v35 }
 0x253   :  { %985 = vmatpush1.msra.mxu0 %v2482_v36  ;;  %1056 = vmatpush1.msra.mxu1 %v2487_v37 }
 0x254   :  { %986 = vmatprep.subr.mxu0 %v2499_v39  ;;  %1057 = vmatprep.subr.mxu1 %v2504_v40 }
 0x255   :  { %987 = vmatpush1.msra.mxu0 %v2511_v41  ;;  %1058 = vmatpush1.msra.mxu1 %v2516_v42 }
 0x256   :  { %988 = vmatprep.subr.mxu0 %v2521_v43  ;;  %1059 = vmatprep.subr.mxu1 %v2526_v44 }
 0x257   :  { %989 = vmatpush1.msra.mxu0 %v2535_v45  ;;  %1060 = vmatpush1.msra.mxu1 %v2540_v46 }
 0x258   :  { %990 = vmatprep.subr.mxu0 %v2552_v48  ;;  %1061 = vmatprep.subr.mxu1 %v2557_v49 }
 0x259   :  { %991 = vmatpush1.msra.mxu0 %v2564_v50  ;;  %1062 = vmatpush1.msra.mxu1 %v2569_v51 }
 0x25a   :  { %992 = vmatprep.subr.mxu0 %v3782_v54  ;;  %1063 = vmatprep.subr.mxu1 %v3783_v62 }
 0x25b   :  { %993 = vmatpush1.msra.mxu0 %v3784_v29  ;;  %1064 = vmatpush1.msra.mxu1 %v3809_v5 }
 0x25c   :  { %994 = vmatprep.subr.mxu0 %v3810_v6  ;;  %1065 = vmatprep.subr.mxu1 %v3811_v7 }
 0x25d   :  { %995 = vmatpush1.msra.mxu0 %v3812_v8  ;;  %1066 = vmatpush1.msra.mxu1 %v3813_v9 }
 0x25e   :  { %996 = vmatprep.subr.mxu0 %v3814_v10  ;;  %1067 = vmatprep.subr.mxu1 %v3815_v12 }
 0x25f   :  { %997 = vmatpush1.msra.mxu0 %v3816_v13  ;;  %1068 = vmatpush1.msra.mxu1 %v3817_v14 }
 0x260   :  { %998 = vmatprep.subr.mxu0 %v3818_v15  ;;  %1069 = vmatprep.subr.mxu1 %v3819_v16 }
 0x261   :  { %999 = vmatpush1.msra.mxu0 %v3820_v17  ;;  %1070 = vmatpush1.msra.mxu1 %v3821_v18 }
 0x262   :  { %1000 = vmatprep.subr.mxu0 %v3822_v19  ;;  %1071 = vmatprep.subr.mxu1 %v3823_v21 }
 0x263   :  { %1001 = vmatpush1.msra.mxu0 %v3824_v22  ;;  %1034 = vmatprep.mubr.f32.mxu0 %v3825_v23 }
 0x264   :  { %1072 = vmatpush1.msra.mxu1 %v3826_v24  ;;  %1105 = vmatprep.mubr.f32.mxu1 %v3825_v23 }
 0x265   :  { %1145 = vmatprep.subr.mxu0 %v3012_v25  ;;  %1216 = vmatprep.subr.mxu1 %v3018_v26 }
 0x304   :  { %v861_v27 = vpop.f32.mrf.mxu0  ;;  %v932_v47 = vpop.f32.mrf.mxu1 }
 0x305   :  { %v937_v30 = vadd.f32 %v861_v27, %v3829_v28  ;;  %v939_v52 = vadd.f32 %v932_v47, %v3832_v58  ;;  %v3044_v47 = vld [vmem:[%s3639_s2 + $0x1c8] sm:$0xff]  ;;  %v3074_v58 = vld [vmem:[%s3639_s2 + $0x1b8] sm:$0xff] }
 0x306   :  { %v863_v31 = vpop.f32.mrf.mxu0  ;;  %v934_v53 = vpop.f32.mrf.mxu1 }
 0x307   :  { %v1852_v32 = vmul.f32 -1.442695, %v937_v30  ;;  %v938_v20 = vadd.f32 %v863_v31, %v3830_v33  ;;  %v940_v59 = vadd.f32 %v934_v53, %v3831_v38  ;;  %v3056_v53 = vld [vmem:[%s3639_s2 + $0x1c0] sm:$0xff]  ;;  %v3062_v38 = vld [vmem:[%s3639_s2 + $0x1d0] sm:$0xff] }
 0x309   :  { %1903 = vpow2.f32 %v1852_v32  ;;  %v1853_v3 = vmul.f32 -1.442695, %v938_v20  ;;  %v1854_v56 = vmul.f32 -1.442695, %v940_v59  ;;  %v3032_v20 = vld [vmem:[%s3639_s2 + $0x1e0] sm:$0xff]  ;;  %v3068_v59 = vld [vmem:[%s3639_s2 + $0x1a8] sm:$0xff] }
 0x30b   :  { %1905 = vpow2.f32 %v1853_v3  ;;  %v3050_v3 = vld [vmem:[%s3639_s2 + $0x1d8] sm:$0xff] }
 0x30c   :  { %1907 = vtanh.f32 %v939_v52  ;;  %v3080_v52 = vld [vmem:[%s3639_s2 + $0x1a0] sm:$0xff] }
 0x30d   :  { %1909 = vpow2.f32 %v1854_v56  ;;  %v3086_v56 = vld [vmem:[%s3639_s2 + $0x1b0] sm:$0xff] }
 0x316   :  { %v1904_v57 = vpop.eup %1903 }
 0x317   :  { %v944_v0 = vadd.f32 1.0, %v1904_v57  ;;  %v3092_v57 = vld [vmem:[%s3639_s2 + $0x188] sm:$0xff] }
 0x318   :  { %v1906_v55 = vpop.eup %1905 }
 0x319   :  { %1911 = vrcp.f32 %v944_v0  ;;  %v950_v61 = vadd.f32 1.0, %v1906_v55  ;;  %v1908_v60 = vpop.eup %1907  ;;  %v3098_v0 = vld [vmem:[%s3639_s2 + $0x198] sm:$0xff]  ;;  %v3104_v55 = vld [vmem:[%s3639_s2 + $0x180] sm:$0xff] }
 0x31a   :  { %v1910_v4 = vpop.eup %1909 }
 0x31b   :  { %1913 = vrcp.f32 %v950_v61  ;;  %v957_v27 = vadd.f32 1.0, %v1910_v4  ;;  %v3110_v61 = vld [vmem:[%s3639_s2 + $0x190] sm:$0xff]  ;;  %v3122_v4 = vld [vmem:[%s3639_s2 + $0x178] sm:$0xff] }
 0x31d   :  { %1915 = vrcp.f32 %v957_v27  ;;  %v3146_v27 = vld [vmem:[%s3639_s2 + $0x158] sm:$0xff] }
 0x326   :  { %v1912_v2 = vpop.eup %1911 }
 0x327   :  { %v961_v11 = vmul.f32 %v1912_v2, %v1908_v60  ;;  %v3116_v60 = vld [vmem:[%s3639_s2 + $0x168] sm:$0xff]  ;;  %v3128_v2 = vld [vmem:[%s3639_s2 + $0x160] sm:$0xff] }
 0x328   :  { %v1914_v1 = vpop.eup %1913 }
 0x329   :  { %v960_v28 = vmul.f32 %v1914_v1, %v2942_v63  ;;  %v3038_v63 = vld [vmem:[%s3639_s2 + $0x1f0] sm:$0xff]  ;;  %v3140_v1 = vld [vmem:[%s3639_s2 + $0x148] sm:$0xff] }
 0x32a   :  { %v1916_v31 = vpop.eup %1915 }
 0x32b   :  { %v3026_v30 = vadd.f32 %v961_v11, %v960_v28  ;;  %v3134_v11 = vld [vmem:[%s3639_s2 + $0x170] sm:$0xff]  ;;  %v3152_v28 = vld [vmem:[%s3639_s2 + $0x140] sm:$0xff] }
 0x32c   :  { %3833 = vst [vmem:[#allocation8_spill] sm:$0xff] %v3152_v28 }
 0x32d   :  { %1917 = vtanh.f32 %v3026_v30 }
 0x33a   :  { %v1918_v32 = vpop.eup %1917 }
 0x33b   :  { %v964_v33 = vmul.f32 %v1918_v32, %v1916_v31  ;;  %v3158_v31 = vld [vmem:[%s3639_s2 + $0x150] sm:$0xff]  ;;  %v3164_v32 = vld [vmem:[%s3639_s2 + $0x128] sm:$0xff] }
 0x33c   :  { %3834 = vst [vmem:[#allocation4_spill] sm:$0xff] %v3158_v31 }
 0x33d   :  { %1035 = vmatmul.mubr.f32.vlgmr.msra.gmra.mxu0 %v964_v33  ;;  %1106 = vmatmul.mubr.f32.vlgmr.msra.gmra.mxu1 %v964_v33  ;;  %v3170_v33 = vld [vmem:[%s3639_s2 + $0x138] sm:$0xff] }
 0x33e   :  { %1146 = vmatpush1.msra.mxu0 %v3032_v20  ;;  %1217 = vmatpush1.msra.mxu1 %v3038_v63 }
 0x33f   :  { %1147 = vmatprep.subr.mxu0 %v3044_v47  ;;  %1218 = vmatprep.subr.mxu1 %v3050_v3 }
 0x340   :  { %1148 = vmatpush1.msra.mxu0 %v3056_v53  ;;  %1219 = vmatpush1.msra.mxu1 %v3062_v38 }
 0x341   :  { %1149 = vmatprep.subr.mxu0 %v3068_v59  ;;  %1220 = vmatprep.subr.mxu1 %v3074_v58 }
 0x342   :  { %1150 = vmatpush1.msra.mxu0 %v3080_v52  ;;  %1221 = vmatpush1.msra.mxu1 %v3086_v56 }
 0x343   :  { %1151 = vmatprep.subr.mxu0 %v3092_v57  ;;  %1222 = vmatprep.subr.mxu1 %v3098_v0 }
 0x344   :  { %1152 = vmatpush1.msra.mxu0 %v3104_v55  ;;  %1223 = vmatpush1.msra.mxu1 %v3110_v61 }
 0x345   :  { %1153 = vmatprep.subr.mxu0 %v3116_v60  ;;  %1224 = vmatprep.subr.mxu1 %v3122_v4 }
 0x346   :  { %1154 = vmatpush1.msra.mxu0 %v3128_v2  ;;  %1225 = vmatpush1.msra.mxu1 %v3134_v11 }
 0x347   :  { %1155 = vmatprep.subr.mxu0 %v3140_v1  ;;  %1226 = vmatprep.subr.mxu1 %v3146_v27 }
 0x348   :  { %1156 = vmatpush1.msra.mxu0 %v3152_v28  ;;  %1227 = vmatpush1.msra.mxu1 %v3158_v31  ;;  %v3176_v28 = vld [vmem:[%s3639_s2 + $0x120] sm:$0xff]  ;;  %v3182_v31 = vld [vmem:[%s3639_s2 + $0x130] sm:$0xff] }
 0x349   :  { %1157 = vmatprep.subr.mxu0 %v3164_v32  ;;  %1228 = vmatprep.subr.mxu1 %v3170_v33 }
 0x34a   :  { %1158 = vmatpush1.msra.mxu0 %v3176_v28  ;;  %1229 = vmatpush1.msra.mxu1 %v3182_v31 }
 0x34b   :  { %1159 = vmatprep.subr.mxu0 %v2468_v34  ;;  %1230 = vmatprep.subr.mxu1 %v2473_v35  ;;  %v3835_v35 = vld [vmem:[#allocation34_spill] sm:$0xff] }
 0x34c   :  { %1160 = vmatpush1.msra.mxu0 %v2482_v36  ;;  %1231 = vmatpush1.msra.mxu1 %v2487_v37 }
 0x34d   :  { %1161 = vmatprep.subr.mxu0 %v2499_v39  ;;  %1232 = vmatprep.subr.mxu1 %v2504_v40  ;;  %v3836_v40 = vld [vmem:[#allocation36_spill] sm:$0xff] }
 0x34e   :  { %1162 = vmatpush1.msra.mxu0 %v2511_v41  ;;  %1233 = vmatpush1.msra.mxu1 %v2516_v42 }
 0x34f   :  { %1163 = vmatprep.subr.mxu0 %v2521_v43  ;;  %1234 = vmatprep.subr.mxu1 %v2526_v44 }
 0x350   :  { %1164 = vmatpush1.msra.mxu0 %v2535_v45  ;;  %1235 = vmatpush1.msra.mxu1 %v2540_v46  ;;  %v3837_v45 = vld [vmem:[#allocation37_spill] sm:$0xff] }
 0x351   :  { %1165 = vmatprep.subr.mxu0 %v2552_v48  ;;  %1236 = vmatprep.subr.mxu1 %v2557_v49  ;;  %v3838_v48 = vld [vmem:[#allocation35_spill] sm:$0xff] }
 0x352   :  { %1166 = vmatpush1.msra.mxu0 %v2564_v50  ;;  %1237 = vmatpush1.msra.mxu1 %v2569_v51 }
 0x353   :  { %1167 = vmatprep.subr.mxu0 %v3782_v54  ;;  %1238 = vmatprep.subr.mxu1 %v3783_v62 }
 0x354   :  { %1168 = vmatpush1.msra.mxu0 %v3784_v29  ;;  %1239 = vmatpush1.msra.mxu1 %v3809_v5 }
 0x355   :  { %1169 = vmatprep.subr.mxu0 %v3810_v6  ;;  %1240 = vmatprep.subr.mxu1 %v3811_v7 }
 0x356   :  { %1170 = vmatpush1.msra.mxu0 %v3812_v8  ;;  %1241 = vmatpush1.msra.mxu1 %v3813_v9 }
 0x357   :  { %1171 = vmatprep.subr.mxu0 %v3814_v10  ;;  %1242 = vmatprep.subr.mxu1 %v3815_v12 }
 0x358   :  { %1172 = vmatpush1.msra.mxu0 %v3816_v13  ;;  %1243 = vmatpush1.msra.mxu1 %v3817_v14 }
 0x359   :  { %1173 = vmatprep.subr.mxu0 %v3818_v15  ;;  %1244 = vmatprep.subr.mxu1 %v3819_v16 }
 0x35a   :  { %1174 = vmatpush1.msra.mxu0 %v3820_v17  ;;  %1245 = vmatpush1.msra.mxu1 %v3821_v18  ;;  %v3839_v17 = vld [vmem:[#allocation8_spill] sm:$0xff] }
 0x35b   :  { %1175 = vmatprep.subr.mxu0 %v3822_v19  ;;  %1246 = vmatprep.subr.mxu1 %v3823_v21  ;;  %v3840_v18 = vld [vmem:[#allocation4_spill] sm:$0xff]  ;;  %v3262_v19 = vld [vmem:[%s3639_s2 + $0x108] sm:$0xff]  ;;  %v3268_v21 = vld [vmem:[%s3639_s2 + $0x118] sm:$0xff] }
 0x35c   :  { %1176 = vmatpush1.msra.mxu0 %v3824_v22  ;;  %1209 = vmatprep.mubr.f32.mxu0 %v3825_v23  ;;  %v3274_v22 = vld [vmem:[%s3639_s2 + $0x100] sm:$0xff] }
 0x35d   :  { %1247 = vmatpush1.msra.mxu1 %v3826_v24  ;;  %1280 = vmatprep.mubr.f32.mxu1 %v3825_v23  ;;  %v3280_v24 = vld [vmem:[%s3639_s2 + $0x110] sm:$0xff] }
 0x35e   :  { %1320 = vmatprep.subr.mxu0 %v3012_v25  ;;  %1391 = vmatprep.subr.mxu1 %v3018_v26 }
 0x3fd   :  { %v1036_v34 = vpop.f32.mrf.mxu0  ;;  %v1107_v42 = vpop.f32.mrf.mxu1 }
 0x3fe   :  { %v1112_v36 = vadd.f32 %v1036_v34, %v3835_v35  ;;  %v1114_v49 = vadd.f32 %v1107_v42, %v3838_v48  ;;  %v3292_v34 = vld [vmem:[%s3639_s2 + $0xf8] sm:$0xff]  ;;  %v3298_v35 = vld [vmem:[%s3639_s2 + $0xe0] sm:$0xff]  ;;  %v3334_v42 = vld [vmem:[%s3639_s2 + $0xa8] sm:$0xff] }
 0x3ff   :  { %v1038_v37 = vpop.f32.mrf.mxu0  ;;  %v1109_v44 = vpop.f32.mrf.mxu1  ;;  %v3364_v48 = vld [vmem:[%s3639_s2 + $0x98] sm:$0xff] }
 0x400   :  { %v1855_v39 = vmul.f32 -1.442695, %v1112_v36  ;;  %v1113_v41 = vadd.f32 %v1038_v37, %v3836_v40  ;;  %v1115_v46 = vadd.f32 %v1109_v44, %v3837_v45  ;;  %v3304_v36 = vld [vmem:[%s3639_s2 + $0xf0] sm:$0xff]  ;;  %v3310_v37 = vld [vmem:[%s3639_s2 + $0xc8] sm:$0xff]  ;;  %v3322_v40 = vld [vmem:[%s3639_s2 + $0xc0] sm:$0xff] }
 0x401   :  { %v3346_v44 = vld [vmem:[%s3639_s2 + $0xa0] sm:$0xff]  ;;  %v3352_v45 = vld [vmem:[%s3639_s2 + $0xb0] sm:$0xff] }
 0x402   :  { %1919 = vpow2.f32 %v1855_v39  ;;  %v1856_v43 = vmul.f32 -1.442695, %v1113_v41  ;;  %v1857_v50 = vmul.f32 -1.442695, %v1115_v46  ;;  %v3316_v39 = vld [vmem:[%s3639_s2 + $0xd8] sm:$0xff]  ;;  %v3328_v41 = vld [vmem:[%s3639_s2 + $0xd0] sm:$0xff] }
 0x403   :  { %v3358_v46 = vld [vmem:[%s3639_s2 + $0x88] sm:$0xff] }
 0x404   :  { %1921 = vpow2.f32 %v1856_v43  ;;  %v3340_v43 = vld [vmem:[%s3639_s2 + $0xb8] sm:$0xff] }
 0x405   :  { %1923 = vtanh.f32 %v1114_v49  ;;  %v3370_v49 = vld [vmem:[%s3639_s2 + $0x80] sm:$0xff] }
 0x406   :  { %1925 = vpow2.f32 %v1857_v50  ;;  %v3376_v50 = vld [vmem:[%s3639_s2 + $0x90] sm:$0xff] }
 0x407   :  { %3841 = vst [vmem:[#allocation5_spill] sm:$0xff] %v3376_v50 }
 0x40f   :  { %v1920_v51 = vpop.eup %1919 }
 0x410   :  { %v1119_v54 = vadd.f32 1.0, %v1920_v51  ;;  %v3382_v51 = vld [vmem:[%s3639_s2 + $0x68] sm:$0xff] }
 0x411   :  { %v1922_v62 = vpop.eup %1921  ;;  %3842 = vst [vmem:[#allocation26_spill] sm:$0xff] %v3382_v51 }
 0x412   :  { %1927 = vrcp.f32 %v1119_v54  ;;  %v1125_v29 = vadd.f32 1.0, %v1922_v62  ;;  %v1924_v5 = vpop.eup %1923  ;;  %v3388_v54 = vld [vmem:[%s3639_s2 + $0x78] sm:$0xff]  ;;  %v3394_v62 = vld [vmem:[%s3639_s2 + $0x60] sm:$0xff] }
 0x413   :  { %v1926_v6 = vpop.eup %1925  ;;  %3843 = vst [vmem:[#allocation28_spill] sm:$0xff] %v3388_v54  ;;  %3844 = vst [vmem:[#allocation29_spill] sm:$0xff] %v3394_v62 }
 0x414   :  { %1929 = vrcp.f32 %v1125_v29  ;;  %v1132_v10 = vadd.f32 1.0, %v1926_v6  ;;  %v3400_v29 = vld [vmem:[%s3639_s2 + $0x70] sm:$0xff]  ;;  %v3412_v6 = vld [vmem:[%s3639_s2 + $0x58] sm:$0xff] }
 0x415   :  { %3845 = vst [vmem:[#allocation27_spill] sm:$0xff] %v3400_v29  ;;  %3847 = vst [vmem:[#allocation10_spill] sm:$0xff] %v3412_v6 }
 0x416   :  { %1931 = vrcp.f32 %v1132_v10  ;;  %v3436_v10 = vld [vmem:[%s3639_s2 + $0x38] sm:$0xff] }
 0x417   :  { %3851 = vst [vmem:[#allocation14_spill] sm:$0xff] %v3436_v10 }
 0x41f   :  { %v1928_v7 = vpop.eup %1927 }
 0x420   :  { %v1136_v8 = vmul.f32 %v1928_v7, %v1924_v5  ;;  %v3406_v5 = vld [vmem:[%s3639_s2 + $0x48] sm:$0xff]  ;;  %v3418_v7 = vld [vmem:[%s3639_s2 + $0x40] sm:$0xff] }
 0x421   :  { %v1930_v9 = vpop.eup %1929  ;;  %3846 = vst [vmem:[#allocation9_spill] sm:$0xff] %v3406_v5  ;;  %3848 = vst [vmem:[#allocation11_spill] sm:$0xff] %v3418_v7 }
 0x422   :  { %v1135_v12 = vmul.f32 %v1930_v9, %v3026_v30  ;;  %v3286_v30 = vld [vmem:[%s3639_s2 + $0xe8] sm:$0xff] }
 0x423   :  { %v1932_v14 = vpop.eup %1931  ;;  %v3430_v9 = vld [vmem:[%s3639_s2 + $0x28] sm:$0xff] }
 0x424   :  { %v3230_v13 = vadd.f32 %v1136_v8, %v1135_v12  ;;  %v3424_v8 = vld [vmem:[%s3639_s2 + $0x50] sm:$0xff]  ;;  %3850 = vst [vmem:[#allocation13_spill] sm:$0xff] %v3430_v9  ;;  %v3442_v12 = vld [vmem:[%s3639_s2 + $0x20] sm:$0xff] }
 0x425   :  { %3849 = vst [vmem:[#allocation12_spill] sm:$0xff] %v3424_v8  ;;  %3852 = vst [vmem:[#allocation15_spill] sm:$0xff] %v3442_v12 }
 0x426   :  { %1933 = vtanh.f32 %v3230_v13 }
 0x433   :  { %v1934_v15 = vpop.eup %1933 }
 0x434   :  { %v1139_v16 = vmul.f32 %v1934_v15, %v1932_v14  ;;  %v3448_v14 = vld [vmem:[%s3639_s2 + $0x30] sm:$0xff]  ;;  %v3454_v15 = vld [vmem:[%s3639_s2 + $0x8] sm:$0xff] }
 0x435   :  { %3853 = vst [vmem:[#allocation16_spill] sm:$0xff] %v3448_v14  ;;  %3854 = vst [vmem:[#allocation17_spill] sm:$0xff] %v3454_v15 }
 0x436   :  { %1210 = vmatmul.mubr.f32.vlgmr.msra.gmra.mxu0 %v1139_v16  ;;  %1281 = vmatmul.mubr.f32.vlgmr.msra.gmra.mxu1 %v1139_v16  ;;  %v3460_v16 = vld [vmem:[%s3639_s2 + $0x18] sm:$0xff] }
 0x437   :  { %1321 = vmatpush1.msra.mxu0 %v3032_v20  ;;  %1392 = vmatpush1.msra.mxu1 %v3038_v63  ;;  %3855 = vst [vmem:[#allocation18_spill] sm:$0xff] %v3460_v16 }
 0x438   :  { %1322 = vmatprep.subr.mxu0 %v3044_v47  ;;  %1393 = vmatprep.subr.mxu1 %v3050_v3 }
 0x439   :  { %1323 = vmatpush1.msra.mxu0 %v3056_v53  ;;  %1394 = vmatpush1.msra.mxu1 %v3062_v38 }
 0x43a   :  { %1324 = vmatprep.subr.mxu0 %v3068_v59  ;;  %1395 = vmatprep.subr.mxu1 %v3074_v58 }
 0x43b   :  { %1325 = vmatpush1.msra.mxu0 %v3080_v52  ;;  %1396 = vmatpush1.msra.mxu1 %v3086_v56 }
 0x43c   :  { %1326 = vmatprep.subr.mxu0 %v3092_v57  ;;  %1397 = vmatprep.subr.mxu1 %v3098_v0 }
 0x43d   :  { %1327 = vmatpush1.msra.mxu0 %v3104_v55  ;;  %1398 = vmatpush1.msra.mxu1 %v3110_v61 }
 0x43e   :  { %1328 = vmatprep.subr.mxu0 %v3116_v60  ;;  %1399 = vmatprep.subr.mxu1 %v3122_v4 }
 0x43f   :  { %1329 = vmatpush1.msra.mxu0 %v3128_v2  ;;  %1400 = vmatpush1.msra.mxu1 %v3134_v11 }
 0x440   :  { %1330 = vmatprep.subr.mxu0 %v3140_v1  ;;  %1401 = vmatprep.subr.mxu1 %v3146_v27 }
 0x441   :  { %1331 = vmatpush1.msra.mxu0 %v3839_v17  ;;  %1402 = vmatpush1.msra.mxu1 %v3840_v18 }
 0x442   :  { %1332 = vmatprep.subr.mxu0 %v3164_v32  ;;  %1403 = vmatprep.subr.mxu1 %v3170_v33 }
 0x443   :  { %1333 = vmatpush1.msra.mxu0 %v3176_v28  ;;  %1404 = vmatpush1.msra.mxu1 %v3182_v31 }
 0x444   :  { %1334 = vmatprep.subr.mxu0 %v3262_v19  ;;  %1405 = vmatprep.subr.mxu1 %v3268_v21 }
 0x445   :  { %1335 = vmatpush1.msra.mxu0 %v3274_v22  ;;  %1406 = vmatpush1.msra.mxu1 %v3280_v24 }
 0x446   :  { %1336 = vmatprep.subr.mxu0 %v3286_v30  ;;  %1407 = vmatprep.subr.mxu1 %v3292_v34 }
 0x447   :  { %1337 = vmatpush1.msra.mxu0 %v3298_v35  ;;  %1408 = vmatpush1.msra.mxu1 %v3304_v36 }
 0x448   :  { %1338 = vmatprep.subr.mxu0 %v3310_v37  ;;  %1409 = vmatprep.subr.mxu1 %v3316_v39 }
 0x449   :  { %1339 = vmatpush1.msra.mxu0 %v3322_v40  ;;  %1410 = vmatpush1.msra.mxu1 %v3328_v41 }
 0x44a   :  { %1340 = vmatprep.subr.mxu0 %v3334_v42  ;;  %1411 = vmatprep.subr.mxu1 %v3340_v43 }
 0x44b   :  { %1341 = vmatpush1.msra.mxu0 %v3346_v44  ;;  %1412 = vmatpush1.msra.mxu1 %v3352_v45 }
 0x44c   :  { %1342 = vmatprep.subr.mxu0 %v3358_v46  ;;  %1413 = vmatprep.subr.mxu1 %v3364_v48 }
 0x44d   :  { %1343 = vmatpush1.msra.mxu0 %v3370_v49  ;;  %1414 = vmatpush1.msra.mxu1 %v3376_v50 }
 0x44e   :  { %1344 = vmatprep.subr.mxu0 %v3382_v51  ;;  %1415 = vmatprep.subr.mxu1 %v3388_v54  ;;  %v3861_v54 = vld [vmem:[#allocation39_spill] sm:$0xff] }
 0x44f   :  { %1345 = vmatpush1.msra.mxu0 %v3394_v62  ;;  %1416 = vmatpush1.msra.mxu1 %v3400_v29  ;;  %v3860_v62 = vld [vmem:[#allocation41_spill] sm:$0xff] }
 0x450   :  { %1346 = vmatprep.subr.mxu0 %v3406_v5  ;;  %1417 = vmatprep.subr.mxu1 %v3412_v6 }
 0x451   :  { %1347 = vmatpush1.msra.mxu0 %v3418_v7  ;;  %1418 = vmatpush1.msra.mxu1 %v3424_v8  ;;  %v3859_v8 = vld [vmem:[#allocation40_spill] sm:$0xff] }
 0x452   :  { %1348 = vmatprep.subr.mxu0 %v3430_v9  ;;  %1419 = vmatprep.subr.mxu1 %v3436_v10 }
 0x453   :  { %1349 = vmatpush1.msra.mxu0 %v3442_v12  ;;  %1420 = vmatpush1.msra.mxu1 %v3448_v14  ;;  %v3466_v12 = vld [vmem:[%s3639_s2] sm:$0xff]  ;;  %v3858_v14 = vld [vmem:[#allocation38_spill] sm:$0xff] }
 0x454   :  { %1350 = vmatprep.subr.mxu0 %v3454_v15  ;;  %1421 = vmatprep.subr.mxu1 %v3460_v16  ;;  %3856 = vst [vmem:[#allocation19_spill] sm:$0xff] %v3466_v12  ;;  %v3473_v15 = vld [vmem:[%s3639_s2 + $0x10] sm:$0xff] }
 0x455   :  { %1351 = vmatpush1.msra.mxu0 %v3466_v12  ;;  %1384 = vmatprep.mubr.f32.mxu0 %v3825_v23  ;;  %3857 = vst [vmem:[#allocation20_spill] sm:$0xff] %v3473_v15 }
 0x456   :  { %1422 = vmatpush1.msra.mxu1 %v3473_v15  ;;  %1455 = vmatprep.mubr.f32.mxu1 %v3825_v23 }
 0x457   :  { %1495 = vmatprep.subr.mxu0 %v3012_v25  ;;  %1566 = vmatprep.subr.mxu1 %v3018_v26 }
 0x4f6   :  { %v1211_v16 = vpop.f32.mrf.mxu0  ;;  %v1282_v6 = vpop.f32.mrf.mxu1 }
 0x4f7   :  { %v1287_v10 = vadd.f32 %v1211_v16, %v3858_v14  ;;  %v1289_v23 = vadd.f32 %v1282_v6, %v3861_v54  ;;  %v3867_v6 = vld [vmem:[#allocation9_spill] sm:$0xff] }
 0x4f8   :  { %v1213_v9 = vpop.f32.mrf.mxu0  ;;  %v1284_v29 = vpop.f32.mrf.mxu1 }
 0x4f9   :  { %v1858_v12 = vmul.f32 -1.442695, %v1287_v10  ;;  %v1288_v7 = vadd.f32 %v1213_v9, %v3859_v8  ;;  %v1290_v15 = vadd.f32 %v1284_v29, %v3860_v62  ;;  %v3866_v29 = vld [vmem:[#allocation27_spill] sm:$0xff] }
 0x4fb   :  { %1935 = vpow2.f32 %v1858_v12  ;;  %v1859_v5 = vmul.f32 -1.442695, %v1288_v7  ;;  %v1860_v51 = vmul.f32 -1.442695, %v1290_v15  ;;  %v3868_v15 = vld [vmem:[#allocation10_spill] sm:$0xff] }
 0x4fd   :  { %1937 = vpow2.f32 %v1859_v5 }
 0x4fe   :  { %1939 = vtanh.f32 %v1289_v23 }
 0x4ff   :  { %1941 = vpow2.f32 %v1860_v51  ;;  %v3865_v51 = vld [vmem:[#allocation29_spill] sm:$0xff] }
 0x508   :  { %v1936_v25 = vpop.eup %1935 }
 0x509   :  { %v1294_v50 = vadd.f32 1.0, %v1936_v25 }
 0x50a   :  { %v1938_v26 = vpop.eup %1937 }
 0x50b   :  { %1943 = vrcp.f32 %v1294_v50  ;;  %v1300_v14 = vadd.f32 1.0, %v1938_v26  ;;  %v1940_v10 = vpop.eup %1939  ;;  %v3862_v26 = vld [vmem:[#allocation5_spill] sm:$0xff]  ;;  %v3864_v50 = vld [vmem:[#allocation28_spill] sm:$0xff] }
 0x50c   :  { %v1942_v8 = vpop.eup %1941 }
 0x50d   :  { %1945 = vrcp.f32 %v1300_v14  ;;  %v1307_v5 = vadd.f32 1.0, %v1942_v8  ;;  %v3869_v14 = vld [vmem:[#allocation11_spill] sm:$0xff]  ;;  %v3871_v8 = vld [vmem:[#allocation13_spill] sm:$0xff] }
 0x50f   :  { %1947 = vrcp.f32 %v1307_v5  ;;  %v3875_v5 = vld [vmem:[#allocation17_spill] sm:$0xff] }
 0x518   :  { %v1944_v9 = vpop.eup %1943 }
 0x519   :  { %v1311_v12 = vmul.f32 %v1944_v9, %v1940_v10  ;;  %v3870_v10 = vld [vmem:[#allocation12_spill] sm:$0xff]  ;;  %v3872_v9 = vld [vmem:[#allocation14_spill] sm:$0xff] }
 0x51a   :  { %v1946_v7 = vpop.eup %1945 }
 0x51b   :  { %v1310_v16 = vmul.f32 %v1946_v7, %v3230_v13  ;;  %v3863_v13 = vld [vmem:[#allocation26_spill] sm:$0xff]  ;;  %v3874_v7 = vld [vmem:[#allocation16_spill] sm:$0xff] }
 0x51c   :  { %v1948_v25 = vpop.eup %1947 }
 0x51d   :  { %v3484_v62 = vadd.f32 %v1311_v12, %v1310_v16  ;;  %v3873_v12 = vld [vmem:[#allocation15_spill] sm:$0xff]  ;;  %v3876_v16 = vld [vmem:[#allocation18_spill] sm:$0xff] }
 0x51f   :  { %1949 = vtanh.f32 %v3484_v62 }
 0x52c   :  { %v1950_v23 = vpop.eup %1949 }
 0x52d   :  { %v1314_v54 = vmul.f32 %v1950_v23, %v1948_v25  ;;  %v3877_v25 = vld [vmem:[#allocation19_spill] sm:$0xff]  ;;  %v3878_v23 = vmov 0.0  }
 0x52f   :  { %1385 = vmatmul.mubr.f32.vlgmr.msra.gmra.mxu0 %v1314_v54  ;;  %1456 = vmatmul.mubr.f32.vlgmr.msra.gmra.mxu1 %v1314_v54  ;;  %v3879_v54 = vld [vmem:[#allocation20_spill] sm:$0xff] }
 0x530   :  { %1496 = vmatpush1.msra.mxu0 %v3032_v20  ;;  %1567 = vmatpush1.msra.mxu1 %v3038_v63 }
 0x531   :  { %1497 = vmatprep.subr.mxu0 %v3044_v47  ;;  %1568 = vmatprep.subr.mxu1 %v3050_v3 }
 0x532   :  { %1498 = vmatpush1.msra.mxu0 %v3056_v53  ;;  %1569 = vmatpush1.msra.mxu1 %v3062_v38 }
 0x533   :  { %1499 = vmatprep.subr.mxu0 %v3068_v59  ;;  %1570 = vmatprep.subr.mxu1 %v3074_v58 }
 0x534   :  { %1500 = vmatpush1.msra.mxu0 %v3080_v52  ;;  %1571 = vmatpush1.msra.mxu1 %v3086_v56 }
 0x535   :  { %1501 = vmatprep.subr.mxu0 %v3092_v57  ;;  %1572 = vmatprep.subr.mxu1 %v3098_v0 }
 0x536   :  { %1502 = vmatpush1.msra.mxu0 %v3104_v55  ;;  %1573 = vmatpush1.msra.mxu1 %v3110_v61 }
 0x537   :  { %1503 = vmatprep.subr.mxu0 %v3116_v60  ;;  %1574 = vmatprep.subr.mxu1 %v3122_v4 }
 0x538   :  { %1504 = vmatpush1.msra.mxu0 %v3128_v2  ;;  %1575 = vmatpush1.msra.mxu1 %v3134_v11 }
 0x539   :  { %1505 = vmatprep.subr.mxu0 %v3140_v1  ;;  %1576 = vmatprep.subr.mxu1 %v3146_v27 }
 0x53a   :  { %1506 = vmatpush1.msra.mxu0 %v3839_v17  ;;  %1577 = vmatpush1.msra.mxu1 %v3840_v18 }
 0x53b   :  { %1507 = vmatprep.subr.mxu0 %v3164_v32  ;;  %1578 = vmatprep.subr.mxu1 %v3170_v33 }
 0x53c   :  { %1508 = vmatpush1.msra.mxu0 %v3176_v28  ;;  %1579 = vmatpush1.msra.mxu1 %v3182_v31 }
 0x53d   :  { %1509 = vmatprep.subr.mxu0 %v3262_v19  ;;  %1580 = vmatprep.subr.mxu1 %v3268_v21 }
 0x53e   :  { %1510 = vmatpush1.msra.mxu0 %v3274_v22  ;;  %1581 = vmatpush1.msra.mxu1 %v3280_v24 }
 0x53f   :  { %1511 = vmatprep.subr.mxu0 %v3286_v30  ;;  %1582 = vmatprep.subr.mxu1 %v3292_v34 }
 0x540   :  { %1512 = vmatpush1.msra.mxu0 %v3298_v35  ;;  %1583 = vmatpush1.msra.mxu1 %v3304_v36 }
 0x541   :  { %1513 = vmatprep.subr.mxu0 %v3310_v37  ;;  %1584 = vmatprep.subr.mxu1 %v3316_v39 }
 0x542   :  { %1514 = vmatpush1.msra.mxu0 %v3322_v40  ;;  %1585 = vmatpush1.msra.mxu1 %v3328_v41 }
 0x543   :  { %1515 = vmatprep.subr.mxu0 %v3334_v42  ;;  %1586 = vmatprep.subr.mxu1 %v3340_v43 }
 0x544   :  { %1516 = vmatpush1.msra.mxu0 %v3346_v44  ;;  %1587 = vmatpush1.msra.mxu1 %v3352_v45 }
 0x545   :  { %1517 = vmatprep.subr.mxu0 %v3358_v46  ;;  %1588 = vmatprep.subr.mxu1 %v3364_v48 }
 0x546   :  { %1518 = vmatpush1.msra.mxu0 %v3370_v49  ;;  %1589 = vmatpush1.msra.mxu1 %v3862_v26 }
 0x547   :  { %1519 = vmatprep.subr.mxu0 %v3863_v13  ;;  %1590 = vmatprep.subr.mxu1 %v3864_v50  ;;  %v3885_v50 = vld [vmem:[#allocation43_spill] sm:$0xff] }
 0x548   :  { %1520 = vmatpush1.msra.mxu0 %v3865_v51  ;;  %1591 = vmatpush1.msra.mxu1 %v3866_v29  ;;  %v3884_v51 = vld [vmem:[#allocation45_spill] sm:$0xff] }
 0x549   :  { %1521 = vmatprep.subr.mxu0 %v3867_v6  ;;  %1592 = vmatprep.subr.mxu1 %v3868_v15 }
 0x54a   :  { %1522 = vmatpush1.msra.mxu0 %v3869_v14  ;;  %1593 = vmatpush1.msra.mxu1 %v3870_v10  ;;  %v3880_v10 = vld [vmem:[#allocation6_spill] sm:$0xff] }
 0x54b   :  { %1523 = vmatprep.subr.mxu0 %v3871_v8  ;;  %1594 = vmatprep.subr.mxu1 %v3872_v9  ;;  %v3881_v8 = vld [vmem:[#allocation7_spill] sm:$0xff] }
 0x54c   :  { %1524 = vmatpush1.msra.mxu0 %v3873_v12  ;;  %1595 = vmatpush1.msra.mxu1 %v3874_v7  ;;  %v3882_v12 = vld [vmem:[#allocation42_spill] sm:$0xff] }
 0x54d   :  { %1525 = vmatprep.subr.mxu0 %v3875_v5  ;;  %1596 = vmatprep.subr.mxu1 %v3876_v16  ;;  %v3883_v5 = vld [vmem:[#allocation44_spill] sm:$0xff] }
 0x54e   :  { %1526 = vmatpush1.msra.mxu0 %v3877_v25  ;;  %1559 = vmatprep.mubr.f32.mxu0 %v3878_v23 }
 0x54f   :  { %1597 = vmatpush1.msra.mxu1 %v3879_v54  ;;  %1630 = vmatprep.mubr.f32.mxu1 %v3878_v23 }
 0x550   :  { %1670 = vmatprep.subr.mxu0 %v3880_v10  ;;  %1741 = vmatprep.subr.mxu1 %v3881_v8 }
 0x5ef   :  { %v1386_v9 = vpop.f32.mrf.mxu0  ;;  %v1457_v16 = vpop.f32.mrf.mxu1 }
 0x5f0   :  { %v1462_v14 = vadd.f32 %v1386_v9, %v3882_v12  ;;  %v1464_v23 = vadd.f32 %v1457_v16, %v3885_v50 }
 0x5f1   :  { %v1388_v7 = vpop.f32.mrf.mxu0  ;;  %v1459_v29 = vpop.f32.mrf.mxu1 }
 0x5f2   :  { %v1861_v15 = vmul.f32 -1.442695, %v1462_v14  ;;  %v1463_v6 = vadd.f32 %v1388_v7, %v3883_v5  ;;  %v1465_v54 = vadd.f32 %v1459_v29, %v3884_v51 }
 0x5f4   :  { %1951 = vpow2.f32 %v1861_v15  ;;  %v1862_v25 = vmul.f32 -1.442695, %v1463_v6  ;;  %v1863_v13 = vmul.f32 -1.442695, %v1465_v54  ;;  %v3908_v54 = vld [vmem:[#allocation50_spill] sm:$0xff] }
 0x5f6   :  { %1953 = vpow2.f32 %v1862_v25 }
 0x5f7   :  { %1955 = vtanh.f32 %v1464_v23 }
 0x5f8   :  { %1957 = vpow2.f32 %v1863_v13 }
 0x601   :  { %v1952_v10 = vpop.eup %1951 }
 0x602   :  { %v1469_v26 = vadd.f32 1.0, %v1952_v10 }
 0x603   :  { %v1954_v8 = vpop.eup %1953 }
 0x604   :  { %1959 = vrcp.f32 %v1469_v26  ;;  %v1475_v9 = vadd.f32 1.0, %v1954_v8  ;;  %v1956_v14 = vpop.eup %1955 }
 0x605   :  { %v1958_v12 = vpop.eup %1957 }
 0x606   :  { %1961 = vrcp.f32 %v1475_v9  ;;  %v1482_v5 = vadd.f32 1.0, %v1958_v12 }
 0x608   :  { %1963 = vrcp.f32 %v1482_v5  ;;  %v3910_v5 = vld [vmem:[#allocation53_spill] sm:$0xff] }
 0x611   :  { %v1960_v15 = vpop.eup %1959 }
 0x612   :  { %v1486_v7 = vmul.f32 %v1960_v15, %v1956_v14  ;;  %v3909_v14 = vld [vmem:[#allocation52_spill] sm:$0xff] }
 0x613   :  { %v1962_v6 = vpop.eup %1961 }
 0x614   :  { %v1485_v25 = vmul.f32 %v1962_v6, %v3484_v62 }
 0x615   :  { %v1964_v50 = vpop.eup %1963 }
 0x616   :  { %v3558_v51 = vadd.f32 %v1486_v7, %v1485_v25 }
 0x618   :  { %1965 = vtanh.f32 %v3558_v51 }
 0x625   :  { %v1966_v29 = vpop.eup %1965 }
 0x626   :  { %v1489_v16 = vmul.f32 %v1966_v29, %v1964_v50 }
 0x628   :  { %1560 = vmatmul.mubr.f32.vlgmr.msra.gmra.mxu0 %v1489_v16  ;;  %1631 = vmatmul.mubr.f32.vlgmr.msra.gmra.mxu1 %v1489_v16 }
 0x629   :  { %1671 = vmatpush1.msra.mxu0 %v3032_v20  ;;  %1742 = vmatpush1.msra.mxu1 %v3038_v63  ;;  %v3886_v20 = vld [vmem:[#allocation5_spill] sm:$0xff]  ;;  %v3887_v63 = vld [vmem:[#allocation26_spill] sm:$0xff] }
 0x62a   :  { %1672 = vmatprep.subr.mxu0 %v3044_v47  ;;  %1743 = vmatprep.subr.mxu1 %v3050_v3  ;;  %v3888_v47 = vld [vmem:[#allocation28_spill] sm:$0xff]  ;;  %v3889_v3 = vld [vmem:[#allocation29_spill] sm:$0xff] }
 0x62b   :  { %1673 = vmatpush1.msra.mxu0 %v3056_v53  ;;  %1744 = vmatpush1.msra.mxu1 %v3062_v38  ;;  %v3890_v53 = vld [vmem:[#allocation27_spill] sm:$0xff]  ;;  %v3891_v38 = vld [vmem:[#allocation9_spill] sm:$0xff] }
 0x62c   :  { %1674 = vmatprep.subr.mxu0 %v3068_v59  ;;  %1745 = vmatprep.subr.mxu1 %v3074_v58  ;;  %v3892_v59 = vld [vmem:[#allocation10_spill] sm:$0xff]  ;;  %v3893_v58 = vld [vmem:[#allocation11_spill] sm:$0xff] }
 0x62d   :  { %1675 = vmatpush1.msra.mxu0 %v3080_v52  ;;  %1746 = vmatpush1.msra.mxu1 %v3086_v56  ;;  %v3894_v52 = vld [vmem:[#allocation12_spill] sm:$0xff]  ;;  %v3895_v56 = vld [vmem:[#allocation13_spill] sm:$0xff] }
 0x62e   :  { %1676 = vmatprep.subr.mxu0 %v3092_v57  ;;  %1747 = vmatprep.subr.mxu1 %v3098_v0  ;;  %v3896_v57 = vld [vmem:[#allocation14_spill] sm:$0xff]  ;;  %v3897_v0 = vld [vmem:[#allocation15_spill] sm:$0xff] }
 0x62f   :  { %1677 = vmatpush1.msra.mxu0 %v3104_v55  ;;  %1748 = vmatpush1.msra.mxu1 %v3110_v61  ;;  %v3898_v55 = vld [vmem:[#allocation16_spill] sm:$0xff]  ;;  %v3899_v61 = vld [vmem:[#allocation17_spill] sm:$0xff] }
 0x630   :  { %1678 = vmatprep.subr.mxu0 %v3116_v60  ;;  %1749 = vmatprep.subr.mxu1 %v3122_v4  ;;  %v3900_v60 = vld [vmem:[#allocation18_spill] sm:$0xff]  ;;  %v3901_v4 = vld [vmem:[#allocation19_spill] sm:$0xff] }
 0x631   :  { %1679 = vmatpush1.msra.mxu0 %v3128_v2  ;;  %1750 = vmatpush1.msra.mxu1 %v3134_v11  ;;  %v3902_v2 = vmov 0.0   ;;  %v3903_v11 = vld [vmem:[#allocation20_spill] sm:$0xff] }
 0x632   :  { %1680 = vmatprep.subr.mxu0 %v3140_v1  ;;  %1751 = vmatprep.subr.mxu1 %v3146_v27  ;;  %v3904_v27 = vld [vmem:[#allocation46_spill] sm:$0xff] }
 0x633   :  { %1681 = vmatpush1.msra.mxu0 %v3839_v17  ;;  %1752 = vmatpush1.msra.mxu1 %v3840_v18 }
 0x634   :  { %1682 = vmatprep.subr.mxu0 %v3164_v32  ;;  %1753 = vmatprep.subr.mxu1 %v3170_v33  ;;  %v3905_v33 = vld [vmem:[#allocation48_spill] sm:$0xff] }
 0x635   :  { %1683 = vmatpush1.msra.mxu0 %v3176_v28  ;;  %1754 = vmatpush1.msra.mxu1 %v3182_v31 }
 0x636   :  { %1684 = vmatprep.subr.mxu0 %v3262_v19  ;;  %1755 = vmatprep.subr.mxu1 %v3268_v21 }
 0x637   :  { %1685 = vmatpush1.msra.mxu0 %v3274_v22  ;;  %1756 = vmatpush1.msra.mxu1 %v3280_v24  ;;  %v3906_v22 = vld [vmem:[#allocation49_spill] sm:$0xff] }
 0x638   :  { %1686 = vmatprep.subr.mxu0 %v3286_v30  ;;  %1757 = vmatprep.subr.mxu1 %v3292_v34  ;;  %v3907_v30 = vld [vmem:[#allocation47_spill] sm:$0xff] }
 0x639   :  { %1687 = vmatpush1.msra.mxu0 %v3298_v35  ;;  %1758 = vmatpush1.msra.mxu1 %v3304_v36 }
 0x63a   :  { %1688 = vmatprep.subr.mxu0 %v3310_v37  ;;  %1759 = vmatprep.subr.mxu1 %v3316_v39 }
 0x63b   :  { %1689 = vmatpush1.msra.mxu0 %v3322_v40  ;;  %1760 = vmatpush1.msra.mxu1 %v3328_v41 }
 0x63c   :  { %1690 = vmatprep.subr.mxu0 %v3334_v42  ;;  %1761 = vmatprep.subr.mxu1 %v3340_v43 }
 0x63d   :  { %1691 = vmatpush1.msra.mxu0 %v3346_v44  ;;  %1762 = vmatpush1.msra.mxu1 %v3352_v45 }
 0x63e   :  { %1692 = vmatprep.subr.mxu0 %v3358_v46  ;;  %1763 = vmatprep.subr.mxu1 %v3364_v48 }
 0x63f   :  { %1693 = vmatpush1.msra.mxu0 %v3370_v49  ;;  %1764 = vmatpush1.msra.mxu1 %v3886_v20 }
 0x640   :  { %1694 = vmatprep.subr.mxu0 %v3887_v63  ;;  %1765 = vmatprep.subr.mxu1 %v3888_v47 }
 0x641   :  { %1695 = vmatpush1.msra.mxu0 %v3889_v3  ;;  %1766 = vmatpush1.msra.mxu1 %v3890_v53 }
 0x642   :  { %1696 = vmatprep.subr.mxu0 %v3891_v38  ;;  %1767 = vmatprep.subr.mxu1 %v3892_v59 }
 0x643   :  { %1697 = vmatpush1.msra.mxu0 %v3893_v58  ;;  %1768 = vmatpush1.msra.mxu1 %v3894_v52 }
 0x644   :  { %1698 = vmatprep.subr.mxu0 %v3895_v56  ;;  %1769 = vmatprep.subr.mxu1 %v3896_v57 }
 0x645   :  { %1699 = vmatpush1.msra.mxu0 %v3897_v0  ;;  %1770 = vmatpush1.msra.mxu1 %v3898_v55 }
 0x646   :  { %1700 = vmatprep.subr.mxu0 %v3899_v61  ;;  %1771 = vmatprep.subr.mxu1 %v3900_v60 }
 0x647   :  { %1701 = vmatpush1.msra.mxu0 %v3901_v4  ;;  %1734 = vmatprep.mubr.f32.mxu0 %v3902_v2 }
 0x648   :  { %1772 = vmatpush1.msra.mxu1 %v3903_v11  ;;  %1805 = vmatprep.mubr.f32.mxu1 %v3902_v2 }
 0x6e8   :  { %v1561_v1 = vpop.f32.mrf.mxu0  ;;  %v1632_v18 = vpop.f32.mrf.mxu1 }
 0x6e9   :  { %v1637_v28 = vadd.f32 %v1561_v1, %v3904_v27  ;;  %v1639_v34 = vadd.f32 %v1632_v18, %v3907_v30 }
 0x6ea   :  { %v1563_v31 = vpop.f32.mrf.mxu0  ;;  %v1634_v21 = vpop.f32.mrf.mxu1 }
 0x6eb   :  { %v1864_v32 = vmul.f32 -1.442695, %v1637_v28  ;;  %v1638_v17 = vadd.f32 %v1563_v31, %v3905_v33  ;;  %v1640_v24 = vadd.f32 %v1634_v21, %v3906_v22 }
 0x6ed   :  { %1967 = vpow2.f32 %v1864_v32  ;;  %v1865_v19 = vmul.f32 -1.442695, %v1638_v17  ;;  %v1866_v35 = vmul.f32 -1.442695, %v1640_v24 }
 0x6ef   :  { %1969 = vpow2.f32 %v1865_v19 }
 0x6f0   :  { %1971 = vtanh.f32 %v1639_v34 }
 0x6f1   :  { %1973 = vpow2.f32 %v1866_v35 }
 0x6fa   :  { %v1968_v36 = vpop.eup %1967 }
 0x6fb   :  { %v1644_v37 = vadd.f32 1.0, %v1968_v36 }
 0x6fc   :  { %v1970_v39 = vpop.eup %1969 }
 0x6fd   :  { %1975 = vrcp.f32 %v1644_v37  ;;  %v1650_v40 = vadd.f32 1.0, %v1970_v39  ;;  %v1972_v41 = vpop.eup %1971 }
 0x6fe   :  { %v1974_v42 = vpop.eup %1973 }
 0x6ff   :  { %1977 = vrcp.f32 %v1650_v40  ;;  %v1657_v46 = vadd.f32 1.0, %v1974_v42 }
 0x701   :  { %1979 = vrcp.f32 %v1657_v46 }
 0x70a   :  { %v1976_v43 = vpop.eup %1975 }
 0x70b   :  { %v1661_v44 = vmul.f32 %v1976_v43, %v1972_v41 }
 0x70c   :  { %v1978_v45 = vpop.eup %1977 }
 0x70d   :  { %v1660_v48 = vmul.f32 %v1978_v45, %v3558_v51  ;;  %v3911_v51 = vld [vmem:[#allocation51_spill] sm:$0xff] }
 0x70e   :  { %v1980_v62 = vpop.eup %1979 }
 0x70f   :  { %v1662_v49 = vadd.f32 %v1661_v44, %v1660_v48 }
 0x711   :  { %1981 = vtanh.f32 %v1662_v49 }
 0x71e   :  { %v1982_v26 = vpop.eup %1981 }
 0x71f   :  { %v1664_v13 = vmul.f32 %v1982_v26, %v1980_v62 }
 0x721   :  { %1735 = vmatmul.mubr.f32.vlgmr.msra.gmra.mxu0 %v1664_v13  ;;  %1806 = vmatmul.mubr.f32.vlgmr.msra.gmra.mxu1 %v1664_v13 }
 0x7e1   :  { %v1736_v23 = vpop.f32.mrf.mxu0  ;;  %v1807_v15 = vpop.f32.mrf.mxu1 }
 0x7e2   :  { %v1812_v10 = vadd.f32 %v1736_v23, %v3908_v54  ;;  %v1814_v50 = vadd.f32 %v1807_v15, %v3911_v51 }
 0x7e3   :  { %v1738_v8 = vpop.f32.mrf.mxu0  ;;  %v1809_v6 = vpop.f32.mrf.mxu1 }
 0x7e4   :  { %v1867_v9 = vmul.f32 -1.442695, %v1812_v10  ;;  %v1813_v12 = vadd.f32 %v1738_v8, %v3909_v14  ;;  %v1815_v25 = vadd.f32 %v1809_v6, %v3910_v5 }
 0x7e6   :  { %1983 = vpow2.f32 %v1867_v9  ;;  %v1868_v7 = vmul.f32 -1.442695, %v1813_v12  ;;  %v1869_v29 = vmul.f32 -1.442695, %v1815_v25 }
 0x7e8   :  { %1985 = vpow2.f32 %v1868_v7 }
 0x7e9   :  { %1987 = vtanh.f32 %v1814_v50 }
 0x7ea   :  { %1989 = vpow2.f32 %v1869_v29 }
 0x7f3   :  { %v1984_v16 = vpop.eup %1983 }
 0x7f4   :  { %v1819_v20 = vadd.f32 1.0, %v1984_v16 }
 0x7f5   :  { %v1986_v63 = vpop.eup %1985 }
 0x7f6   :  { %1991 = vrcp.f32 %v1819_v20  ;;  %v1825_v47 = vadd.f32 1.0, %v1986_v63  ;;  %v1988_v3 = vpop.eup %1987 }
 0x7f7   :  { %v1990_v53 = vpop.eup %1989 }
 0x7f8   :  { %1993 = vrcp.f32 %v1825_v47  ;;  %v1832_v52 = vadd.f32 1.0, %v1990_v53 }
 0x7fa   :  { %1995 = vrcp.f32 %v1832_v52 }
 0x803   :  { %v1992_v38 = vpop.eup %1991 }
 0x804   :  { %v1836_v59 = vmul.f32 %v1992_v38, %v1988_v3 }
 0x805   :  { %v1994_v58 = vpop.eup %1993 }
 0x806   :  { %v1835_v56 = vmul.f32 %v1994_v58, %v1662_v49 }
 0x807   :  { %v1996_v0 = vpop.eup %1995 }
 0x808   :  { %v1837_v57 = vadd.f32 %v1836_v59, %v1835_v56 }
 0x80a   :  { %1997 = vtanh.f32 %v1837_v57 }
 0x817   :  { %v1998_v55 = vpop.eup %1997 }
 0x818   :  { %v1839_v61 = vmul.f32 %v1998_v55, %v1996_v0 }
 0x81a   :  { %1840 = vst [vmem:[%s3641_s4] sm:$0xff] %v1839_v61 }

</bundles_post_ra>
